<compile_context>
chip_gen: v7x
topology: tpu7x:2x2x1
jax: 0.10.0
libtpu: 0.0.40
codegen_flags: <defaults>
</compile_context>

<pallas_src>
import functools

import jax
import jax.numpy as jnp
import numpy as np
from jax import lax
from jax.experimental import pallas as pl
from jax.experimental.pallas import tpu as pltpu

# ---- problem sizes (small, consistent with the module) ---------------------
B = 2          # batch
F = 32         # feature_dim (d_model)
H = 4          # num_heads
DIM = F // H   # per-head dim
N = 16         # number of points in x
M = 16         # number of points in source (must equal N for the packed mask)
EPS = 1e-5     # InstanceNorm1d default eps


def attn_prop_kernel(x_ref, s_ref, w_ref, b_ref, o_ref, *, dim, heads, feat):
    x = x_ref[...]      # (B*N, F)  original channel order
    src = s_ref[...]    # (B*M, F)
    bn = x_ref.shape[0]
    bm_rows = s_ref.shape[0]

    # --- static slices of the packed, pre-transposed weight / bias slabs ----
    wq_t = w_ref[0:feat, 0:feat]                          # (F, F)
    wkv_t = w_ref[0:feat, feat:3 * feat]                  # (F, 2F) = [Wk.T | Wv.T]
    wm_t = w_ref[0:feat, 3 * feat:4 * feat]               # (F, F)  rows = head-contig msg chans
    w1a_t = w_ref[feat:2 * feat, 0:2 * feat]              # (F, 2F) x-part of W1
    w1b_t = w_ref[feat:2 * feat, 2 * feat:4 * feat]       # (F, 2F) message-part of W1
    w2_t = w_ref[2 * feat:4 * feat, 0:feat]               # (2F, F)
    # block-diagonal matrix: 1/N inside a batch block, 0 across batches
    avg = w_ref[2 * feat:2 * feat + bn, feat:feat + bm_rows]   # (B*N, B*M)

    bq = b_ref[0:1, 0:feat]
    bkv = b_ref[0:1, feat:3 * feat]
    bmrg = b_ref[0:1, 3 * feat:4 * feat]
    b1 = b_ref[1:2, 0:2 * feat]
    b2 = b_ref[1:2, 2 * feat:3 * feat]

    in_batch = avg > 0.0          # same-batch mask for attention scores

    # ---- projections (Conv1d k=1 == matmul), batch folded into rows --------
    q = jnp.dot(x, wq_t, preferred_element_type=jnp.float32) + bq        # (B*N, F)
    kv = jnp.dot(src, wkv_t, preferred_element_type=jnp.float32) + bkv   # (B*M, 2F)
    k = kv[:, 0:feat]
    v = kv[:, feat:2 * feat]

    scale = 1.0 / (dim ** 0.5)

    # ---- multi-head attention with merge conv fused into the head loop -----
    msg = jnp.zeros_like(q)                                              # (B*N, F)
    for h in range(heads):
        sl = slice(h * dim, (h + 1) * dim)
        qh, kh, vh = q[:, sl], k[:, sl], v[:, sl]                        # (rows, DIM)
        sc = lax.dot_general(qh, kh, (((1,), (1,)), ((), ())),
                             preferred_element_type=jnp.float32) * scale  # (B*N, B*M)
        sc = jnp.where(in_batch, sc, -1e30)       # mask cross-batch pairs
        sc = sc - jnp.max(sc, axis=-1, keepdims=True)
        e = jnp.exp(sc)
        p = e * pl.reciprocal(jnp.sum(e, axis=-1, keepdims=True), approx=True)
        mh = jnp.dot(p, vh, preferred_element_type=jnp.float32)          # (B*N, DIM)
        msg = msg + jnp.dot(mh, wm_t[sl, :], preferred_element_type=jnp.float32)
    message = msg + bmrg                                                 # (B*N, F)

    # ---- MLP([2F,2F,F]) on cat([x, message]) without a concatenate ---------
    h1 = (jnp.dot(x, w1a_t, preferred_element_type=jnp.float32)
          + jnp.dot(message, w1b_t, preferred_element_type=jnp.float32)
          + b1)                                                          # (B*N, 2F)

    # InstanceNorm1d (affine=False): per-batch mean/var over the point axis,
    # computed with the block-diagonal averaging matmul (stats broadcast to rows).
    mean = jnp.dot(avg, h1, preferred_element_type=jnp.float32)
    cen = h1 - mean
    var = jnp.dot(avg, cen * cen, preferred_element_type=jnp.float32)
    h1r = jnp.maximum(cen * lax.rsqrt(var + EPS), 0.0)                   # ReLU

    o_ref[...] = jnp.dot(h1r, w2_t, preferred_element_type=jnp.float32) + b2


def attentional_propagation(x_rows, src_rows, wslab, bslab):
    """x_rows: (B*N, F), src_rows: (B*M, F) float32; returns (B*N, F)."""
    bn, f = x_rows.shape
    bms, _ = src_rows.shape
    kernel = functools.partial(attn_prop_kernel, dim=DIM, heads=H, feat=F)
    return pl.pallas_call(
        kernel,
        out_shape=jax.ShapeDtypeStruct((bn, f), jnp.float32),
        grid_spec=pltpu.PrefetchScalarGridSpec(
            num_scalar_prefetch=0,
            grid=(1,),                                     # single step: work is tiny
            in_specs=[
                pl.BlockSpec((bn, f), lambda i: (0, 0)),            # x rows
                pl.BlockSpec((bms, f), lambda i: (0, 0)),           # source rows
                pl.BlockSpec((4 * F, 4 * F), lambda i: (0, 0)),     # weight slab
                pl.BlockSpec((8, 4 * F), lambda i: (0, 0)),         # bias slab
            ],
            out_specs=pl.BlockSpec((bn, f), lambda i: (0, 0)),
        ),
        compiler_params=pltpu.CompilerParams(dimension_semantics=("arbitrary",)),
    )(x_rows, src_rows, wslab, bslab)


def make_params(key):
    """Deterministic synthetic weights with the shapes nn.Conv1d(k=1) implies."""
    ks = jax.random.split(key, 12)
    s = 0.1
    wq = jax.random.normal(ks[0], (F, F), jnp.float32) * s
    bq = jax.random.normal(ks[1], (F,), jnp.float32) * s
    wk = jax.random.normal(ks[2], (F, F), jnp.float32) * s
    bk = jax.random.normal(ks[3], (F,), jnp.float32) * s
    wv = jax.random.normal(ks[4], (F, F), jnp.float32) * s
    bv = jax.random.normal(ks[5], (F,), jnp.float32) * s
    wm = jax.random.normal(ks[6], (F, F), jnp.float32) * s
    bm = jax.random.normal(ks[7], (F,), jnp.float32) * s
    w1 = jax.random.normal(ks[8], (2 * F, 2 * F), jnp.float32) * s
    b1 = jax.random.normal(ks[9], (2 * F,), jnp.float32) * s
    w2 = jax.random.normal(ks[10], (F, 2 * F), jnp.float32) * s
    b2 = jnp.zeros((F,), jnp.float32)   # nn.init.constant_(mlp[-1].bias, 0.0)
    return wq, bq, wk, bk, wv, bv, wm, bm, w1, b1, w2, b2


def pack_params(params):
    """Permute heads to contiguous blocks, pre-transpose everything, and pack
    the 12 tensors (plus the block-diagonal averaging/mask matrix) into one
    (128,128) weight slab and one (8,128) bias slab."""
    wq, bq, wk, bk, wv, bv, wm, bm, w1, b1, w2, b2 = [np.asarray(p) for p in params]

    # SuperGlue views projection channel c as (d, h) with c = d*H + h; reorder
    # so head h owns contiguous block [h*DIM, (h+1)*DIM) inside the kernel.
    j = np.arange(F)
    perm = (j % DIM) * H + (j // DIM)       # perm[h*DIM + d] = d*H + h

    wq_t = wq[perm].T                       # (F, F)
    wkv_t = np.concatenate([wk[perm].T, wv[perm].T], axis=1)   # (F, 2F)
    wm_t = wm[:, perm].T                    # (F, F): rows = head-contig msg channels
    w1_t = w1.T                             # (2F, 2F)
    w1a_t, w1b_t = w1_t[:F], w1_t[F:]       # x-part / message-part of W1
    w2_t = w2.T                             # (2F, F)

    # block-diagonal averaging matrix (1/N inside each batch block)
    avg = np.kron(np.eye(B, dtype=np.float32),
                  np.full((N, N), 1.0 / N, dtype=np.float32))  # (B*N, B*N)

    wslab = np.zeros((4 * F, 4 * F), np.float32)               # (128, 128)
    wslab[0:F, 0:F] = wq_t
    wslab[0:F, F:3 * F] = wkv_t
    wslab[0:F, 3 * F:4 * F] = wm_t
    wslab[F:2 * F, 0:2 * F] = w1a_t
    wslab[F:2 * F, 2 * F:4 * F] = w1b_t
    wslab[2 * F:4 * F, 0:F] = w2_t
    wslab[2 * F:2 * F + B * N, F:F + B * M] = avg

    bslab = np.zeros((8, 4 * F), np.float32)                   # (8, 128)
    bslab[0, 0:F] = bq[perm]
    bslab[0, F:2 * F] = bk[perm]
    bslab[0, 2 * F:3 * F] = bv[perm]
    bslab[0, 3 * F:4 * F] = bm                                  # output-channel bias: unpermuted
    bslab[1, 0:2 * F] = b1
    bslab[1, 2 * F:3 * F] = b2
    return jnp.asarray(wslab), jnp.asarray(bslab)


def reference_ncw(x_ncw, s_ncw, params):
    """Pure-JAX transcription of the PyTorch forward (NCW layout)."""
    wq, bq, wk, bk, wv, bv, wm, bm, w1, b1, w2, b2 = params
    conv = lambda w, b, t: jnp.einsum('oc,bcn->bon', w, t) + b[None, :, None]
    q, k, v = conv(wq, bq, x_ncw), conv(wk, bk, s_ncw), conv(wv, bv, s_ncw)
    qv = q.reshape(B, DIM, H, N)
    kv = k.reshape(B, DIM, H, M)
    vv = v.reshape(B, DIM, H, M)
    scores = jnp.einsum('bdhn,bdhm->bhnm', qv, kv) / (DIM ** 0.5)
    prob = jax.nn.softmax(scores, axis=-1)
    xatt = jnp.einsum('bhnm,bdhm->bdhn', prob, vv)
    msg = conv(wm, bm, xatt.reshape(B, F, N))
    y = jnp.concatenate([x_ncw, msg], axis=1)
    h1 = conv(w1, b1, y)
    mean = h1.mean(axis=2, keepdims=True)
    var = ((h1 - mean) ** 2).mean(axis=2, keepdims=True)
    h1r = jnp.maximum((h1 - mean) / jnp.sqrt(var + EPS), 0.0)
    return conv(w2, b2, h1r)


if __name__ == "__main__":
    assert N == M, "packed same-batch mask assumes N == M"
    key = jax.random.PRNGKey(0)
    kx, ks, kp = jax.random.split(key, 3)

    # PyTorch-layout inputs (B, F, N) / (B, F, M)
    x_ncw = jax.random.normal(kx, (B, F, N), jnp.float32)
    s_ncw = jax.random.normal(ks, (B, F, M), jnp.float32)

    params = make_params(kp)
    wslab, bslab = pack_params(params)

    # kernel layout: batch folded into rows, features on the lane axis
    x_rows = jnp.transpose(x_ncw, (0, 2, 1)).reshape(B * N, F)
    s_rows = jnp.transpose(s_ncw, (0, 2, 1)).reshape(B * M, F)

    out_rows = attentional_propagation(x_rows, s_rows, wslab, bslab)
    out_rows = jax.block_until_ready(out_rows)

    # verify against a pure-JAX transcription of the PyTorch module
    ref = reference_ncw(x_ncw, s_ncw, params)                      # (B, F, N)
    got = jnp.transpose(out_rows.reshape(B, N, F), (0, 2, 1))      # (B, F, N)
    # tolerance loosened for the EUP approximate reciprocal in the softmax
    np.testing.assert_allclose(np.asarray(got), np.asarray(ref), atol=2e-3, rtol=2e-3)

    print("KERNEL_OK")
</pallas_src>

<mosaic_0001>
module attributes {stable_mosaic.version = 11 : i64} {
  func.func @attn_prop_kernel(%arg0: i32, %arg1: memref<32x32xf32, #tpu.memory_space<vmem>>, %arg2: memref<32x32xf32, #tpu.memory_space<vmem>>, %arg3: memref<128x128xf32, #tpu.memory_space<vmem>>, %arg4: memref<8x128xf32, #tpu.memory_space<vmem>>, %arg5: memref<32x32xf32, #tpu.memory_space<vmem>>) attributes {dimension_semantics = [#tpu.dimension_semantics<arbitrary>], iteration_bounds = array<i64: 1>, scalar_prefetch = 0 : i64, scratch_operands = 0 : i64, tpu.core_type = #tpu.core_type<tc>, window_params = [{pipeline_mode = #tpu.pipeline_mode<synchronous>, transform_indices = @transform_0, window_bounds = array<i64: 32, 32>}, {pipeline_mode = #tpu.pipeline_mode<synchronous>, transform_indices = @transform_1, window_bounds = array<i64: 32, 32>}, {pipeline_mode = #tpu.pipeline_mode<synchronous>, transform_indices = @transform_2, window_bounds = array<i64: 128, 128>}, {pipeline_mode = #tpu.pipeline_mode<synchronous>, transform_indices = @transform_3, window_bounds = array<i64: 8, 128>}, {pipeline_mode = #tpu.pipeline_mode<synchronous>, transform_indices = @transform_4, window_bounds = array<i64: 32, 32>}]} {
    %c0 = arith.constant 0 : index
    %c0_0 = arith.constant 0 : index
    %0 = vector.load %arg1[%c0, %c0_0] : memref<32x32xf32, #tpu.memory_space<vmem>>, vector<32x32xf32>
    %c0_1 = arith.constant 0 : index
    %c0_2 = arith.constant 0 : index
    %1 = vector.load %arg2[%c0_1, %c0_2] : memref<32x32xf32, #tpu.memory_space<vmem>>, vector<32x32xf32>
    %c0_3 = arith.constant 0 : index
    %c0_4 = arith.constant 0 : index
    %2 = vector.load %arg3[%c0_3, %c0_4] : memref<128x128xf32, #tpu.memory_space<vmem>>, vector<32x32xf32>
    %c0_5 = arith.constant 0 : index
    %c32 = arith.constant 32 : index
    %3 = vector.load %arg3[%c0_5, %c32] : memref<128x128xf32, #tpu.memory_space<vmem>>, vector<32x64xf32>
    %c0_6 = arith.constant 0 : index
    %c96 = arith.constant 96 : index
    %4 = vector.load %arg3[%c0_6, %c96] : memref<128x128xf32, #tpu.memory_space<vmem>>, vector<32x32xf32>
    %c32_7 = arith.constant 32 : index
    %c0_8 = arith.constant 0 : index
    %5 = vector.load %arg3[%c32_7, %c0_8] : memref<128x128xf32, #tpu.memory_space<vmem>>, vector<32x64xf32>
    %c32_9 = arith.constant 32 : index
    %c64 = arith.constant 64 : index
    %6 = vector.load %arg3[%c32_9, %c64] : memref<128x128xf32, #tpu.memory_space<vmem>>, vector<32x64xf32>
    %c64_10 = arith.constant 64 : index
    %c0_11 = arith.constant 0 : index
    %7 = vector.load %arg3[%c64_10, %c0_11] : memref<128x128xf32, #tpu.memory_space<vmem>>, vector<64x32xf32>
    %c64_12 = arith.constant 64 : index
    %c32_13 = arith.constant 32 : index
    %8 = vector.load %arg3[%c64_12, %c32_13] : memref<128x128xf32, #tpu.memory_space<vmem>>, vector<32x32xf32>
    %c0_14 = arith.constant 0 : index
    %c0_15 = arith.constant 0 : index
    %9 = vector.load %arg4[%c0_14, %c0_15] : memref<8x128xf32, #tpu.memory_space<vmem>>, vector<1x32xf32>
    %c0_16 = arith.constant 0 : index
    %c32_17 = arith.constant 32 : index
    %10 = vector.load %arg4[%c0_16, %c32_17] : memref<8x128xf32, #tpu.memory_space<vmem>>, vector<1x64xf32>
    %c0_18 = arith.constant 0 : index
    %c96_19 = arith.constant 96 : index
    %11 = vector.load %arg4[%c0_18, %c96_19] : memref<8x128xf32, #tpu.memory_space<vmem>>, vector<1x32xf32>
    %c1 = arith.constant 1 : index
    %c0_20 = arith.constant 0 : index
    %12 = vector.load %arg4[%c1, %c0_20] : memref<8x128xf32, #tpu.memory_space<vmem>>, vector<1x64xf32>
    %c1_21 = arith.constant 1 : index
    %c64_22 = arith.constant 64 : index
    %13 = vector.load %arg4[%c1_21, %c64_22] : memref<8x128xf32, #tpu.memory_space<vmem>>, vector<1x32xf32>
    %cst = arith.constant 0.000000e+00 : f32
    %14 = vector.broadcast %cst : f32 to vector<32x32xf32>
    %15 = arith.cmpf ogt, %8, %14 : vector<32x32xf32>
    %cst_23 = arith.constant dense<0.000000e+00> : vector<32x32xf32>
    %16 = tpu.matmul %0, %2, %cst_23 {dimension_numbers = #tpu.dot_dimension_numbers<[1], [0], [0], [1], [0, 0, 1, 1], [], []>} : vector<32x32xf32>, vector<32x32xf32>, vector<32x32xf32> -> vector<32x32xf32>
    %17 = vector.broadcast %9 : vector<1x32xf32> to vector<32x32xf32>
    %18 = arith.addf %16, %17 : vector<32x32xf32>
    %cst_24 = arith.constant dense<0.000000e+00> : vector<32x64xf32>
    %19 = tpu.matmul %1, %3, %cst_24 {dimension_numbers = #tpu.dot_dimension_numbers<[1], [0], [0], [1], [0, 0, 1, 1], [], []>} : vector<32x32xf32>, vector<32x64xf32>, vector<32x64xf32> -> vector<32x64xf32>
    %20 = vector.broadcast %10 : vector<1x64xf32> to vector<32x64xf32>
    %21 = arith.addf %19, %20 : vector<32x64xf32>
    %22 = vector.extract_strided_slice %21 {offsets = [0, 0], sizes = [32, 32], strides = [1, 1]} : vector<32x64xf32> to vector<32x32xf32>
    %23 = vector.extract_strided_slice %21 {offsets = [0, 32], sizes = [32, 32], strides = [1, 1]} : vector<32x64xf32> to vector<32x32xf32>
    %cst_25 = arith.constant 0.000000e+00 : f32
    %24 = vector.broadcast %cst_25 : f32 to vector<32x32xf32>
    %25 = vector.extract_strided_slice %18 {offsets = [0, 0], sizes = [32, 8], strides = [1, 1]} : vector<32x32xf32> to vector<32x8xf32>
    %26 = vector.extract_strided_slice %22 {offsets = [0, 0], sizes = [32, 8], strides = [1, 1]} : vector<32x32xf32> to vector<32x8xf32>
    %27 = vector.extract_strided_slice %23 {offsets = [0, 0], sizes = [32, 8], strides = [1, 1]} : vector<32x32xf32> to vector<32x8xf32>
    %cst_26 = arith.constant dense<0.000000e+00> : vector<32x32xf32>
    %28 = tpu.matmul %25, %26, %cst_26 {dimension_numbers = #tpu.dot_dimension_numbers<[1], [1], [0], [0], [0, 0, 1, 0], [], []>} : vector<32x8xf32>, vector<32x8xf32>, vector<32x32xf32> -> vector<32x32xf32>
    %cst_27 = arith.constant 0.353553385 : f32
    %29 = vector.broadcast %cst_27 : f32 to vector<32x32xf32>
    %30 = arith.mulf %28, %29 : vector<32x32xf32>
    %cst_28 = arith.constant -1.000000e+30 : f32
    %31 = vector.broadcast %cst_28 : f32 to vector<32x32xf32>
    %32 = arith.select %15, %30, %31 : vector<32x32xi1>, vector<32x32xf32>
    %cst_29 = arith.constant dense<0xFF800000> : vector<32xf32>
    %33 = vector.multi_reduction <maximumf>, %32, %cst_29 [1] : vector<32x32xf32> to vector<32xf32>
    %34 = vector.shape_cast %33 : vector<32xf32> to vector<32x1xf32>
    %35 = vector.broadcast %34 : vector<32x1xf32> to vector<32x32xf32>
    %36 = arith.subf %32, %35 : vector<32x32xf32>
    %37 = math.exp %36 : vector<32x32xf32>
    %cst_30 = arith.constant dense<0.000000e+00> : vector<32xf32>
    %38 = vector.multi_reduction <add>, %37, %cst_30 [1] : vector<32x32xf32> to vector<32xf32>
    %39 = vector.shape_cast %38 : vector<32xf32> to vector<32x1xf32>
    %40 = tpu.reciprocal %39 {approx = true} : vector<32x1xf32> -> vector<32x1xf32>
    %41 = vector.broadcast %40 : vector<32x1xf32> to vector<32x32xf32>
    %42 = arith.mulf %37, %41 : vector<32x32xf32>
    %cst_31 = arith.constant dense<0.000000e+00> : vector<32x8xf32>
    %43 = tpu.matmul %42, %27, %cst_31 {dimension_numbers = #tpu.dot_dimension_numbers<[1], [0], [0], [1], [0, 0, 1, 1], [], []>} : vector<32x32xf32>, vector<32x8xf32>, vector<32x8xf32> -> vector<32x8xf32>
    %44 = vector.extract_strided_slice %4 {offsets = [0, 0], sizes = [8, 32], strides = [1, 1]} : vector<32x32xf32> to vector<8x32xf32>
    %cst_32 = arith.constant dense<0.000000e+00> : vector<32x32xf32>
    %45 = tpu.matmul %43, %44, %cst_32 {dimension_numbers = #tpu.dot_dimension_numbers<[1], [0], [0], [1], [0, 0, 1, 1], [], []>} : vector<32x8xf32>, vector<8x32xf32>, vector<32x32xf32> -> vector<32x32xf32>
    %46 = arith.addf %24, %45 : vector<32x32xf32>
    %47 = vector.extract_strided_slice %18 {offsets = [0, 8], sizes = [32, 8], strides = [1, 1]} : vector<32x32xf32> to vector<32x8xf32>
    %48 = vector.extract_strided_slice %22 {offsets = [0, 8], sizes = [32, 8], strides = [1, 1]} : vector<32x32xf32> to vector<32x8xf32>
    %49 = vector.extract_strided_slice %23 {offsets = [0, 8], sizes = [32, 8], strides = [1, 1]} : vector<32x32xf32> to vector<32x8xf32>
    %cst_33 = arith.constant dense<0.000000e+00> : vector<32x32xf32>
    %50 = tpu.matmul %47, %48, %cst_33 {dimension_numbers = #tpu.dot_dimension_numbers<[1], [1], [0], [0], [0, 0, 1, 0], [], []>} : vector<32x8xf32>, vector<32x8xf32>, vector<32x32xf32> -> vector<32x32xf32>
    %cst_34 = arith.constant 0.353553385 : f32
    %51 = vector.broadcast %cst_34 : f32 to vector<32x32xf32>
    %52 = arith.mulf %50, %51 : vector<32x32xf32>
    %cst_35 = arith.constant -1.000000e+30 : f32
    %53 = vector.broadcast %cst_35 : f32 to vector<32x32xf32>
    %54 = arith.select %15, %52, %53 : vector<32x32xi1>, vector<32x32xf32>
    %cst_36 = arith.constant dense<0xFF800000> : vector<32xf32>
    %55 = vector.multi_reduction <maximumf>, %54, %cst_36 [1] : vector<32x32xf32> to vector<32xf32>
    %56 = vector.shape_cast %55 : vector<32xf32> to vector<32x1xf32>
    %57 = vector.broadcast %56 : vector<32x1xf32> to vector<32x32xf32>
    %58 = arith.subf %54, %57 : vector<32x32xf32>
    %59 = math.exp %58 : vector<32x32xf32>
    %cst_37 = arith.constant dense<0.000000e+00> : vector<32xf32>
    %60 = vector.multi_reduction <add>, %59, %cst_37 [1] : vector<32x32xf32> to vector<32xf32>
    %61 = vector.shape_cast %60 : vector<32xf32> to vector<32x1xf32>
    %62 = tpu.reciprocal %61 {approx = true} : vector<32x1xf32> -> vector<32x1xf32>
    %63 = vector.broadcast %62 : vector<32x1xf32> to vector<32x32xf32>
    %64 = arith.mulf %59, %63 : vector<32x32xf32>
    %cst_38 = arith.constant dense<0.000000e+00> : vector<32x8xf32>
    %65 = tpu.matmul %64, %49, %cst_38 {dimension_numbers = #tpu.dot_dimension_numbers<[1], [0], [0], [1], [0, 0, 1, 1], [], []>} : vector<32x32xf32>, vector<32x8xf32>, vector<32x8xf32> -> vector<32x8xf32>
    %66 = vector.extract_strided_slice %4 {offsets = [8, 0], sizes = [8, 32], strides = [1, 1]} : vector<32x32xf32> to vector<8x32xf32>
    %cst_39 = arith.constant dense<0.000000e+00> : vector<32x32xf32>
    %67 = tpu.matmul %65, %66, %cst_39 {dimension_numbers = #tpu.dot_dimension_numbers<[1], [0], [0], [1], [0, 0, 1, 1], [], []>} : vector<32x8xf32>, vector<8x32xf32>, vector<32x32xf32> -> vector<32x32xf32>
    %68 = arith.addf %46, %67 : vector<32x32xf32>
    %69 = vector.extract_strided_slice %18 {offsets = [0, 16], sizes = [32, 8], strides = [1, 1]} : vector<32x32xf32> to vector<32x8xf32>
    %70 = vector.extract_strided_slice %22 {offsets = [0, 16], sizes = [32, 8], strides = [1, 1]} : vector<32x32xf32> to vector<32x8xf32>
    %71 = vector.extract_strided_slice %23 {offsets = [0, 16], sizes = [32, 8], strides = [1, 1]} : vector<32x32xf32> to vector<32x8xf32>
    %cst_40 = arith.constant dense<0.000000e+00> : vector<32x32xf32>
    %72 = tpu.matmul %69, %70, %cst_40 {dimension_numbers = #tpu.dot_dimension_numbers<[1], [1], [0], [0], [0, 0, 1, 0], [], []>} : vector<32x8xf32>, vector<32x8xf32>, vector<32x32xf32> -> vector<32x32xf32>
    %cst_41 = arith.constant 0.353553385 : f32
    %73 = vector.broadcast %cst_41 : f32 to vector<32x32xf32>
    %74 = arith.mulf %72, %73 : vector<32x32xf32>
    %cst_42 = arith.constant -1.000000e+30 : f32
    %75 = vector.broadcast %cst_42 : f32 to vector<32x32xf32>
    %76 = arith.select %15, %74, %75 : vector<32x32xi1>, vector<32x32xf32>
    %cst_43 = arith.constant dense<0xFF800000> : vector<32xf32>
    %77 = vector.multi_reduction <maximumf>, %76, %cst_43 [1] : vector<32x32xf32> to vector<32xf32>
    %78 = vector.shape_cast %77 : vector<32xf32> to vector<32x1xf32>
    %79 = vector.broadcast %78 : vector<32x1xf32> to vector<32x32xf32>
    %80 = arith.subf %76, %79 : vector<32x32xf32>
    %81 = math.exp %80 : vector<32x32xf32>
    %cst_44 = arith.constant dense<0.000000e+00> : vector<32xf32>
    %82 = vector.multi_reduction <add>, %81, %cst_44 [1] : vector<32x32xf32> to vector<32xf32>
    %83 = vector.shape_cast %82 : vector<32xf32> to vector<32x1xf32>
    %84 = tpu.reciprocal %83 {approx = true} : vector<32x1xf32> -> vector<32x1xf32>
    %85 = vector.broadcast %84 : vector<32x1xf32> to vector<32x32xf32>
    %86 = arith.mulf %81, %85 : vector<32x32xf32>
    %cst_45 = arith.constant dense<0.000000e+00> : vector<32x8xf32>
    %87 = tpu.matmul %86, %71, %cst_45 {dimension_numbers = #tpu.dot_dimension_numbers<[1], [0], [0], [1], [0, 0, 1, 1], [], []>} : vector<32x32xf32>, vector<32x8xf32>, vector<32x8xf32> -> vector<32x8xf32>
    %88 = vector.extract_strided_slice %4 {offsets = [16, 0], sizes = [8, 32], strides = [1, 1]} : vector<32x32xf32> to vector<8x32xf32>
    %cst_46 = arith.constant dense<0.000000e+00> : vector<32x32xf32>
    %89 = tpu.matmul %87, %88, %cst_46 {dimension_numbers = #tpu.dot_dimension_numbers<[1], [0], [0], [1], [0, 0, 1, 1], [], []>} : vector<32x8xf32>, vector<8x32xf32>, vector<32x32xf32> -> vector<32x32xf32>
    %90 = arith.addf %68, %89 : vector<32x32xf32>
    %91 = vector.extract_strided_slice %18 {offsets = [0, 24], sizes = [32, 8], strides = [1, 1]} : vector<32x32xf32> to vector<32x8xf32>
    %92 = vector.extract_strided_slice %22 {offsets = [0, 24], sizes = [32, 8], strides = [1, 1]} : vector<32x32xf32> to vector<32x8xf32>
    %93 = vector.extract_strided_slice %23 {offsets = [0, 24], sizes = [32, 8], strides = [1, 1]} : vector<32x32xf32> to vector<32x8xf32>
    %cst_47 = arith.constant dense<0.000000e+00> : vector<32x32xf32>
    %94 = tpu.matmul %91, %92, %cst_47 {dimension_numbers = #tpu.dot_dimension_numbers<[1], [1], [0], [0], [0, 0, 1, 0], [], []>} : vector<32x8xf32>, vector<32x8xf32>, vector<32x32xf32> -> vector<32x32xf32>
    %cst_48 = arith.constant 0.353553385 : f32
    %95 = vector.broadcast %cst_48 : f32 to vector<32x32xf32>
    %96 = arith.mulf %94, %95 : vector<32x32xf32>
    %cst_49 = arith.constant -1.000000e+30 : f32
    %97 = vector.broadcast %cst_49 : f32 to vector<32x32xf32>
    %98 = arith.select %15, %96, %97 : vector<32x32xi1>, vector<32x32xf32>
    %cst_50 = arith.constant dense<0xFF800000> : vector<32xf32>
    %99 = vector.multi_reduction <maximumf>, %98, %cst_50 [1] : vector<32x32xf32> to vector<32xf32>
    %100 = vector.shape_cast %99 : vector<32xf32> to vector<32x1xf32>
    %101 = vector.broadcast %100 : vector<32x1xf32> to vector<32x32xf32>
    %102 = arith.subf %98, %101 : vector<32x32xf32>
    %103 = math.exp %102 : vector<32x32xf32>
    %cst_51 = arith.constant dense<0.000000e+00> : vector<32xf32>
    %104 = vector.multi_reduction <add>, %103, %cst_51 [1] : vector<32x32xf32> to vector<32xf32>
    %105 = vector.shape_cast %104 : vector<32xf32> to vector<32x1xf32>
    %106 = tpu.reciprocal %105 {approx = true} : vector<32x1xf32> -> vector<32x1xf32>
    %107 = vector.broadcast %106 : vector<32x1xf32> to vector<32x32xf32>
    %108 = arith.mulf %103, %107 : vector<32x32xf32>
    %cst_52 = arith.constant dense<0.000000e+00> : vector<32x8xf32>
    %109 = tpu.matmul %108, %93, %cst_52 {dimension_numbers = #tpu.dot_dimension_numbers<[1], [0], [0], [1], [0, 0, 1, 1], [], []>} : vector<32x32xf32>, vector<32x8xf32>, vector<32x8xf32> -> vector<32x8xf32>
    %110 = vector.extract_strided_slice %4 {offsets = [24, 0], sizes = [8, 32], strides = [1, 1]} : vector<32x32xf32> to vector<8x32xf32>
    %cst_53 = arith.constant dense<0.000000e+00> : vector<32x32xf32>
    %111 = tpu.matmul %109, %110, %cst_53 {dimension_numbers = #tpu.dot_dimension_numbers<[1], [0], [0], [1], [0, 0, 1, 1], [], []>} : vector<32x8xf32>, vector<8x32xf32>, vector<32x32xf32> -> vector<32x32xf32>
    %112 = arith.addf %90, %111 : vector<32x32xf32>
    %113 = vector.broadcast %11 : vector<1x32xf32> to vector<32x32xf32>
    %114 = arith.addf %112, %113 : vector<32x32xf32>
    %cst_54 = arith.constant dense<0.000000e+00> : vector<32x64xf32>
    %115 = tpu.matmul %0, %5, %cst_54 {dimension_numbers = #tpu.dot_dimension_numbers<[1], [0], [0], [1], [0, 0, 1, 1], [], []>} : vector<32x32xf32>, vector<32x64xf32>, vector<32x64xf32> -> vector<32x64xf32>
    %cst_55 = arith.constant dense<0.000000e+00> : vector<32x64xf32>
    %116 = tpu.matmul %114, %6, %cst_55 {dimension_numbers = #tpu.dot_dimension_numbers<[1], [0], [0], [1], [0, 0, 1, 1], [], []>} : vector<32x32xf32>, vector<32x64xf32>, vector<32x64xf32> -> vector<32x64xf32>
    %117 = arith.addf %115, %116 : vector<32x64xf32>
    %118 = vector.broadcast %12 : vector<1x64xf32> to vector<32x64xf32>
    %119 = arith.addf %117, %118 : vector<32x64xf32>
    %cst_56 = arith.constant dense<0.000000e+00> : vector<32x64xf32>
    %120 = tpu.matmul %8, %119, %cst_56 {dimension_numbers = #tpu.dot_dimension_numbers<[1], [0], [0], [1], [0, 0, 1, 1], [], []>} : vector<32x32xf32>, vector<32x64xf32>, vector<32x64xf32> -> vector<32x64xf32>
    %121 = arith.subf %119, %120 : vector<32x64xf32>
    %122 = arith.mulf %121, %121 : vector<32x64xf32>
    %cst_57 = arith.constant dense<0.000000e+00> : vector<32x64xf32>
    %123 = tpu.matmul %8, %122, %cst_57 {dimension_numbers = #tpu.dot_dimension_numbers<[1], [0], [0], [1], [0, 0, 1, 1], [], []>} : vector<32x32xf32>, vector<32x64xf32>, vector<32x64xf32> -> vector<32x64xf32>
    %cst_58 = arith.constant 9.99999974E-6 : f32
    %124 = vector.broadcast %cst_58 : f32 to vector<32x64xf32>
    %125 = arith.addf %123, %124 : vector<32x64xf32>
    %126 = math.rsqrt %125 : vector<32x64xf32>
    %127 = arith.mulf %121, %126 : vector<32x64xf32>
    %cst_59 = arith.constant 0.000000e+00 : f32
    %128 = vector.broadcast %cst_59 : f32 to vector<32x64xf32>
    %129 = arith.maximumf %127, %128 : vector<32x64xf32>
    %cst_60 = arith.constant dense<0.000000e+00> : vector<32x32xf32>
    %130 = tpu.matmul %129, %7, %cst_60 {dimension_numbers = #tpu.dot_dimension_numbers<[1], [0], [0], [1], [0, 0, 1, 1], [], []>} : vector<32x64xf32>, vector<64x32xf32>, vector<32x32xf32> -> vector<32x32xf32>
    %131 = vector.broadcast %13 : vector<1x32xf32> to vector<32x32xf32>
    %132 = arith.addf %130, %131 : vector<32x32xf32>
    %c0_61 = arith.constant 0 : index
    %c0_62 = arith.constant 0 : index
    %133 = vector.load %arg5[%c0_61, %c0_62] : memref<32x32xf32, #tpu.memory_space<vmem>>, vector<32x32xf32>
    tpu.vector_store %arg5[%c0_61, %c0_62], %132 {strides = array<i32>} : memref<32x32xf32, #tpu.memory_space<vmem>>, vector<32x32xf32>,
    return
  }
  func.func @transform_0(%arg0: i32) -> (i32, i32) {
    %c0_i32 = arith.constant 0 : i32
    %c0_i32_0 = arith.constant 0 : i32
    %c0_i32_1 = arith.constant 0 : i32
    return %c0_i32, %c0_i32_0 : i32, i32
  }
  func.func @transform_1(%arg0: i32) -> (i32, i32) {
    %c0_i32 = arith.constant 0 : i32
    %c0_i32_0 = arith.constant 0 : i32
    %c0_i32_1 = arith.constant 0 : i32
    return %c0_i32, %c0_i32_0 : i32, i32
  }
  func.func @transform_2(%arg0: i32) -> (i32, i32) {
    %c0_i32 = arith.constant 0 : i32
    %c0_i32_0 = arith.constant 0 : i32
    %c0_i32_1 = arith.constant 0 : i32
    return %c0_i32, %c0_i32_0 : i32, i32
  }
  func.func @transform_3(%arg0: i32) -> (i32, i32) {
    %c0_i32 = arith.constant 0 : i32
    %c0_i32_0 = arith.constant 0 : i32
    %c0_i32_1 = arith.constant 0 : i32
    return %c0_i32, %c0_i32_0 : i32, i32
  }
  func.func @transform_4(%arg0: i32) -> (i32, i32) {
    %c0_i32 = arith.constant 0 : i32
    %c0_i32_0 = arith.constant 0 : i32
    %c0_i32_1 = arith.constant 0 : i32
    return %c0_i32, %c0_i32_0 : i32, i32
  }
}

</mosaic_0001>

<bundles_post_ra>
// kernel: tpu_custom_call.1
= control target key start
LH: loop header
LB: loop body
LE: loop exit
PB: predicated region body
PF: predicated region fallthrough
CT: control target
= control target key end

     0   :  { %9 = vsyncpa [#allocation3], 0  ;;  %s3938_s0 = inlined_call_operand.hbm [shape: f32[32,32], index: 0, kind: input, shape index: {}]   ;;  %s3939_s1 = inlined_call_operand.hbm [shape: f32[32,32], index: 1, kind: input, shape index: {}]   ;;  %s3940_s2 = inlined_call_operand.hbm [shape: f32[128,128], index: 2, kind: input, shape index: {}]   ;;  %s3941_s3 = inlined_call_operand.vmem [shape: f32[8,128], index: 3, kind: input, shape index: {}]   ;;  %s3942_s4 = inlined_call_operand.hbm [shape: f32[32,32], index: 4, kind: output, shape index: {}]  }
   0x1   :  { %10 = vsyncpa [#allocation6], 0 }
   0x2   :  { %11 = vsyncpa [#allocation4], 0  ;;  %s3463_s15 = smov [#allocation5]   ;;  %s3464_s17 = smov [#allocation2]  }
   0x3   :  { %s29_s16 = sshll.u32 %s3463_s15, 4  ;;  %s17_s18 = sshll.u32 %s3464_s17, 4  ;;  %s30_s16 = int_to_ptr.vmem [resolvable:$true] %s29_s16  ;;  %s3503_s18 = int_to_ptr.vmem [resolvable:$true] %s17_s18 }
   0x4   :  { %s3369_s21 = scalar_lea.hbm %s3939_s1, 512 }
   0x5   :  { %p3370_p0 = scmp.ne.s32.totalorder %s3939_s1, %s3369_s21  ;;  %p3373_p1 = scmp.lt.u32.totalorder %s3369_s21, %s3939_s1 }
   0x7   :  { %p3375_p2 = pnand %p3373_p1, %p3370_p0 }
   0x9   :  { %3378 = shalt.err (!%p3375_p2)
}
   0xa   :  { %s3379_s26 = scalar_lea.vmem %s30_s16, 512  ;;  %p3384_p4 = scmp.lt.s32.totalorder %s30_s16, %s30_s16 }
   0xb   :  { %p3380_p3 = scmp.ne.s32.totalorder %s30_s16, %s3379_s26  ;;  %p3385_p5 = scmp.lt.s32.totalorder %s3379_s26, %s3379_s26 }
   0xd   :  { %p3386_p6 = por %p3385_p5, %p3384_p4 }
   0xf   :  { %p3387_p7 = pnand %p3386_p6, %p3380_p3 }
  0x11   :  { %3390 = shalt.err (!%p3387_p7)
}
  0x12   :  { %s3465_s27 = smov 128   ;;  %s3466_s28 = smov 8  }
  0x13   :  { %35 = dma.hbm_to_vmem [thread:$0]  %s3939_s1, 512, %s30_s16, [#allocation6], %s3465_s27, %s3465_s27, %s3466_s28  }
  0x14   :  { %s3391_s7 = scalar_lea.hbm %s3938_s0, 512 }
  0x15   :  { %p3392_p8 = scmp.ne.s32.totalorder %s3938_s0, %s3391_s7  ;;  %p3395_p9 = scmp.lt.u32.totalorder %s3391_s7, %s3938_s0 }
  0x17   :  { %p3397_p10 = pnand %p3395_p9, %p3392_p8 }
  0x19   :  { %3400 = shalt.err (!%p3397_p10)
}
  0x1a   :  { %s3401_s12 = scalar_lea.vmem %s3503_s18, 512  ;;  %p3406_p12 = scmp.lt.s32.totalorder %s3503_s18, %s3503_s18 }
  0x1b   :  { %p3402_p11 = scmp.ne.s32.totalorder %s3503_s18, %s3401_s12  ;;  %p3407_p13 = scmp.lt.s32.totalorder %s3401_s12, %s3401_s12 }
  0x1d   :  { %p3408_p0 = por %p3407_p13, %p3406_p12 }
  0x1f   :  { %p3409_p1 = pnand %p3408_p0, %p3402_p11 }
  0x21   :  { %3412 = shalt.err (!%p3409_p1)
}
  0x22   :  { %23 = dma.hbm_to_vmem [thread:$0]  %s3938_s0, 512, %s3503_s18, [#allocation3], %s3465_s27, %s3465_s27, %s3466_s28  }
  0x23   :  { %s3467_s14 = smov [#allocation7]   ;;  %s3413_s19 = scalar_lea.hbm %s3940_s2, 2048 }
  0x24   :  { %s41_s15 = sshll.u32 %s3467_s14, 4  ;;  %p3414_p2 = scmp.ne.s32.totalorder %s3940_s2, %s3413_s19  ;;  %s42_s15 = int_to_ptr.vmem [resolvable:$true] %s41_s15 }
  0x25   :  { %p3417_p3 = scmp.lt.u32.totalorder %s3413_s19, %s3940_s2 }
  0x27   :  { %p3419_p4 = pnand %p3417_p3, %p3414_p2 }
  0x29   :  { %3422 = shalt.err (!%p3419_p4)
}
  0x2a   :  { %s3423_s24 = scalar_lea.vmem %s42_s15, 2048  ;;  %p3428_p6 = scmp.lt.s32.totalorder %s42_s15, %s42_s15 }
  0x2b   :  { %p3424_p5 = scmp.ne.s32.totalorder %s42_s15, %s3423_s24  ;;  %p3429_p7 = scmp.lt.s32.totalorder %s3423_s24, %s3423_s24 }
  0x2d   :  { %p3430_p8 = por %p3429_p7, %p3428_p6 }
  0x2f   :  { %p3431_p9 = pnand %p3430_p8, %p3424_p5 }
  0x31   :  { %3434 = shalt.err (!%p3431_p9)
}
  0x32   :  { %47 = dma.hbm_to_vmem [thread:$0]  %s3940_s2, 2048, %s42_s15, [#allocation6], %s3465_s27, %s3465_s27, %s3466_s28  }
  0x33   :  { %3457 = dma.done.wait [#allocation3], 512  }
  0x34   :  { %3458 = vsyncadd [#allocation3], 4294966784 }
  0x35   :  { %3459 = dma.done.wait [#allocation6], 2560  }
  0x36   :  { %3460 = vsyncadd [#allocation6], 4294964736  ;;  %vm97_vm0 = vcmask 261120   ;;  %v3555_v0 = vld [vmem:[#allocation7] sm:$0xff]  ;;  %v3557_v1 = vld [vmem:[#allocation7 + $0x8] sm:$0xff]  ;;  %s3468_s2 = smov 96  }
  0x37   :  { %v69_v2 = vld [vmem:[#allocation7 + $0x10] sm:$0xff]  ;;  %v3196_v3 = vpack.i.bf16 %v3557_v1, %v3555_v0  ;;  %v70_v4 = vld [vmem:[#allocation7 + $0x18] sm:$0xff]  ;;  %v3021_v5 = vpack.c.bf16 %v3557_v1, %v3555_v0  ;;  %v59_v6 = vld [vmem:[#allocation2] sm:$0xff]  ;;  %vm312_vm1 = vcmask 64512   ;;  %s3469_s29 = smov 32   ;;  %vm446_vm4 = vcmask 523520  }
  0x38   :  { %v3025_v7 = vpack.c.bf16 %v70_v4, %v69_v2  ;;  %2779 = vmatprep.mubr.msk.f32.mxu1 %vm97_vm0, %v59_v6  ;;  %v3201_v8 = vpack.i.bf16 %v70_v4, %v69_v2  ;;  %v2533_v9 = vld [vmem:[%s3941_s3] ss:$0 sm:$0xff]  ;;  %v60_v10 = vld [vmem:[#allocation2 + $0x8] sm:$0xff]  ;;  %v61_v11 = vld [vmem:[#allocation2 + $0x10] sm:$0xff]  ;;  %s3470_s30 = smov 120   ;;  %s3471_s5 = smov 112  }
  0x39   :  { %3197 = vrot.lane.b32.xlu0 %v3196_v3, %s3468_s2  ;;  %3022 = vmatprep.subr.bf16.mxu1 %v3021_v5  ;;  %v62_v12 = vld [vmem:[#allocation2 + $0x18] sm:$0xff]  ;;  %v63_v13 = vld [vmem:[#allocation5] sm:$0xff]  ;;  %v64_v22 = vld [vmem:[#allocation5 + $0x8] sm:$0xff]  ;;  %s3472_s6 = smov 104   ;;  %s3473_s7 = smov 88   ;;  %vm2413_vm8 = vcmask 523264  }
  0x3a   :  { %3024 = vmatpush3.bf16.msra.mxu1 %v3021_v5  ;;  %212 = vrot.lane.b32.xlu1 %v2533_v9, %s3468_s2  ;;  %v65_v23 = vld [vmem:[#allocation5 + $0x10] sm:$0xff]  ;;  %v66_v24 = vld [vmem:[#allocation5 + $0x18] sm:$0xff]  ;;  %vm3583_vm2 = vmpackc.low %vm312_vm1, %vm312_vm1  ;;  %s3474_s8 = smov 80   ;;  %s3475_s9 = smov 72  }
  0x3b   :  { %3026 = vmatprep.subr.bf16.mxu1 %v3025_v7  ;;  %v3615_v55 = vld [vmem:[#allocation7 + $0x48] sm:$0xff]  ;;  %v3617_v56 = vld [vmem:[#allocation7 + $0x40] sm:$0xff]  ;;  %v3621_v57 = vld [vmem:[#allocation7 + $0x58] sm:$0xff]  ;;  %s3476_s10 = smov 64  }
  0x3c   :  { %vm90_vm3 = vcmp.gt.f32.partialorder %v3615_v55, 0.0  ;;  %vm89_vm5 = vcmp.gt.f32.partialorder %v3617_v56, 0.0  ;;  %v3623_v59 = vld [vmem:[#allocation7 + $0x50] sm:$0xff]  ;;  %vm92_vm6 = vcmp.gt.f32.partialorder %v3621_v57, 0.0 }
  0x3d   :  { %3202 = vrot.lane.b32.xlu0 %v3201_v8, %s3468_s2  ;;  %vm91_vm7 = vcmp.gt.f32.partialorder %v3623_v59, 0.0 }
  0x3e   :  { %3028 = vmatpush3.bf16.msra.mxu1 %v3025_v7 }
  0x41   :  { %2780 = vmatmul.mubr.msk.f32.vlgmr.msra.gmra.mrb[0].mxu1 %vm97_vm0, %v60_v10 }
  0x42   :  { %2782 = vmatprep.mubr.msk.f32.mxu1 %vm97_vm0, %v61_v11 }
  0x45   :  { %2783 = vmatmul.mubr.msk.f32.gmra.mrb[2].mxu1 %vm97_vm0, %v62_v12 }
  0x46   :  { %2793 = vmatprep.mubr.msk.f32.mxu1 %vm97_vm0, %v63_v13 }
  0xab   :  { %v3198_v14 = vpop.permute.xlu0 %3197 }
  0xac   :  { %v3200_v15 = vunpack.i.h.bf16 %v3198_v14  ;;  %v3199_v16 = vunpack.i.l.bf16 %v3198_v14  ;;  %v213_v30 = vpop.permute.xlu1 %212 }
  0xae   :  { %v3029_v17 = vpack.c.bf16 %v3200_v15, %v3199_v16 }
  0xaf   :  { %v3203_v18 = vpop.permute.xlu0 %3202 }
  0xb0   :  { %v3205_v19 = vunpack.i.h.bf16 %v3203_v18  ;;  %v3204_v20 = vunpack.i.l.bf16 %v3203_v18  ;;  %3030 = vmatprep.subr.bf16.mxu1 %v3029_v17 }
  0xb1   :  { %3032 = vmatpush3.bf16.msra.mxu1 %v3029_v17 }
  0xb2   :  { %v3033_v21 = vpack.c.bf16 %v3205_v19, %v3204_v20 }
  0xb4   :  { %3034 = vmatprep.subr.bf16.mxu1 %v3033_v21 }
  0xb5   :  { %3036 = vmatpush3.bf16.msra.mxu1 %v3033_v21 }
  0xb8   :  { %2794 = vmatmul.mubr.msk.f32.vlgmr.msra.gmra.mrb[4].mxu1 %vm97_vm0, %v64_v22 }
  0xb9   :  { %2796 = vmatprep.mubr.msk.f32.mxu1 %vm97_vm0, %v65_v23 }
  0xbc   :  { %2797 = vmatmul.mubr.msk.f32.gmra.mrb[6].mxu1 %vm97_vm0, %v66_v24 }
 0x114   :  { %v2781_v25 = vpop.f32.mrb[0].mxu1 }
 0x115   :  { %v176_v26 = vpop.f32.mrb[1].mxu1  ;;  %v3599_v44 = vadd.f32 %v2781_v25, %v2533_v9 }
 0x116   :  { %v3577_v27 = vadd.f32 %v2533_v9, %v176_v26 }
 0x118   :  { %v2784_v28 = vpop.f32.mrb[2].mxu1  ;;  %2807 = vmatprep.mubr.msk.f32.mxu0 %vm312_vm1, %v3577_v27 }
 0x119   :  { %v186_v29 = vpop.f32.mrb[3].mxu1  ;;  %v3607_v46 = vadd.f32 %v2784_v28, %v2533_v9 }
 0x11a   :  { %v3601_v45 = vadd.f32 %v2533_v9, %v186_v29 }
 0x18b   :  { %v2795_v31 = vpop.f32.mrb[4].mxu1 }
 0x18c   :  { %v299_v32 = vadd.f32 %v2795_v31, %v213_v30  ;;  %v293_v33 = vpop.f32.mrb[5].mxu1 }
 0x18d   :  { %v294_v34 = vadd.f32 %v293_v33, %v213_v30 }
 0x18f   :  { %v2798_v36 = vpop.f32.mrb[6].mxu1  ;;  %v3037_v37 = vpack.c.bf16 %v299_v32, %v294_v34  ;;  %v3587_v38 = vpack.i.bf16 %v299_v32, %v294_v34 }
 0x190   :  { %v309_v39 = vadd.f32 %v2798_v36, %v213_v30  ;;  %v303_v40 = vpop.f32.mrb[7].mxu1 }
 0x191   :  { %v304_v41 = vadd.f32 %v303_v40, %v213_v30  ;;  %3039 = vmatprep.subr.msk.bf16.mxu0 %vm3583_vm2, %v3037_v37 }
 0x192   :  { %3042 = vmatpush3.bf16.xpose.msk.msra.mxu0 %vm3583_vm2, %v3037_v37 }
 0x193   :  { %v3043_v42 = vpack.c.bf16 %v309_v39, %v304_v41  ;;  %v3593_v43 = vpack.i.bf16 %v309_v39, %v304_v41 }
 0x195   :  { %3045 = vmatprep.subr.msk.bf16.mxu0 %vm3583_vm2, %v3043_v42 }
 0x19a   :  { %3048 = vmatpush3.bf16.xpose.msk.msra.mxu0 %vm3583_vm2, %v3043_v42 }
 0x1a1   :  { %2808 = vmatmul.mubr.msk.f32.vlgmr.msra.gmra.mrb[0].mxu0 %vm312_vm1, %v3599_v44 }
 0x1a2   :  { %2810 = vmatprep.mubr.msk.f32.mxu0 %vm312_vm1, %v3601_v45 }
 0x1a5   :  { %2811 = vmatmul.mubr.msk.f32.gmra.mrb[2].mxu0 %vm312_vm1, %v3607_v46 }
 0x274   :  { %v2809_v47 = vpop.f32.mrb[0].mxu0 }
 0x275   :  { %v423_v48 = vmul.f32 0.35355338, %v2809_v47  ;;  %v403_v49 = vpop.f32.mrb[1].mxu0 }
 0x276   :  { %v422_v50 = vmul.f32 0.35355338, %v403_v49 }
 0x277   :  { %432 = vrot.lane.b32.xlu0 %v423_v48, %s3469_s29 }
 0x278   :  { %430 = vrot.lane.b32.xlu1 %v422_v50, %s3469_s29  ;;  %v2812_v51 = vpop.f32.mrb[2].mxu0 }
 0x279   :  { %v425_v52 = vmul.f32 0.35355338, %v2812_v51  ;;  %v413_v53 = vpop.f32.mrb[3].mxu0 }
 0x27a   :  { %v424_v54 = vmul.f32 0.35355338, %v413_v53 }
 0x27b   :  { %436 = vrot.lane.b32.xlu0 %v425_v52, %s3469_s29 }
 0x27c   :  { %434 = vrot.lane.b32.xlu1 %v424_v54, %s3469_s29 }
 0x2e9   :  { %v433_v58 = vpop.permute.xlu0 %432 }
 0x2ea   :  { %v431_v60 = vpop.permute.xlu1 %430  ;;  %v443_v61 = vsel %vm90_vm3, %v433_v58, -1e+30 }
 0x2eb   :  { %v450_v62 = vsel %vm446_vm4, %v443_v61, -inf  ;;  %v442_v63 = vsel %vm89_vm5, %v431_v60, -1e+30 }
 0x2ec   :  { %451 = vmax.xlane.f32.xlu0 %v450_v62  ;;  %v447_v2 = vsel %vm446_vm4, %v442_v63, -inf }
 0x2ed   :  { %v437_v3 = vpop.permute.xlu0 %436  ;;  %448 = vmax.xlane.f32.xlu1 %v447_v2 }
 0x2ee   :  { %v435_v4 = vpop.permute.xlu1 %434  ;;  %v445_v5 = vsel %vm92_vm6, %v437_v3, -1e+30 }
 0x2ef   :  { %v456_v6 = vsel %vm446_vm4, %v445_v5, -inf  ;;  %v444_v7 = vsel %vm91_vm7, %v435_v4, -1e+30 }
 0x2f0   :  { %v453_v8 = vsel %vm446_vm4, %v444_v7, -inf }
 0x2f1   :  { %457 = vmax.xlane.f32.xlu1 %v456_v6  ;;  %454 = vmax.xlane.f32.xlu0 %v453_v8 }
 0x379   :  { %v452_v9 = vpop.xlane.xlu0 %451 }
 0x37a   :  { %v460_v10 = vsub.f32 %v443_v61, %v452_v9  ;;  %v449_v11 = vpop.xlane.xlu1 %448 }
 0x37b   :  { %v459_v12 = vsub.f32 %v442_v63, %v449_v11 }
 0x37c   :  { %v465_v13 = vmul.f32 1.442695, %v460_v10 }
 0x37d   :  { %v463_v14 = vmul.f32 1.442695, %v459_v12 }
 0x37e   :  { %3286 = vpow2.f32 %v465_v13  ;;  %v455_v15 = vpop.xlane.xlu0 %454  ;;  %v458_v16 = vpop.xlane.xlu1 %457 }
 0x37f   :  { %3288 = vpow2.f32 %v463_v14  ;;  %v461_v17 = vsub.f32 %v444_v7, %v455_v15  ;;  %v462_v18 = vsub.f32 %v445_v5, %v458_v16 }
 0x381   :  { %v467_v19 = vmul.f32 1.442695, %v461_v17  ;;  %v469_v20 = vmul.f32 1.442695, %v462_v18 }
 0x383   :  { %3290 = vpow2.f32 %v467_v19 }
 0x384   :  { %3292 = vpow2.f32 %v469_v20 }
 0x388   :  { %v3287_v21 = vpop.eup %3286 }
 0x389   :  { %v3289_v22 = vpop.eup %3288  ;;  %477 = vrot.lane.b32.xlu1 %v3287_v21, %s3468_s2 }
 0x38a   :  { %475 = vrot.lane.b32.xlu0 %v3289_v22, %s3468_s2 }
 0x38d   :  { %v3291_v23 = vpop.eup %3290 }
 0x38e   :  { %v3293_v24 = vpop.eup %3292  ;;  %479 = vrot.lane.b32.xlu1 %v3291_v23, %s3468_s2 }
 0x38f   :  { %481 = vrot.lane.b32.xlu0 %v3293_v24, %s3468_s2 }
 0x3fb   :  { %v478_v25 = vpop.permute.xlu1 %477 }
 0x3fc   :  { %v476_v26 = vpop.permute.xlu0 %475  ;;  %v490_v28 = vsel %vm97_vm0, %v478_v25, 0.0 }
 0x3fd   :  { %491 = vadd.xlane.f32.xlu0 %v490_v28  ;;  %v487_v29 = vsel %vm97_vm0, %v476_v26, 0.0 }
 0x3fe   :  { %488 = vadd.xlane.f32.xlu1 %v487_v29 }
 0x400   :  { %v480_v30 = vpop.permute.xlu1 %479 }
 0x401   :  { %v482_v31 = vpop.permute.xlu0 %481  ;;  %v493_v32 = vsel %vm97_vm0, %v480_v30, 0.0 }
 0x402   :  { %v496_v33 = vsel %vm97_vm0, %v482_v31, 0.0  ;;  %494 = vadd.xlane.f32.xlu0 %v493_v32 }
 0x403   :  { %497 = vadd.xlane.f32.xlu1 %v496_v33 }
 0x414   :  { %3212 = vrot.lane.b32.xlu1 %v3593_v43, %s3468_s2 }
 0x418   :  { %3217 = vrot.lane.b32.xlu1 %v3587_v38, %s3470_s30  ;;  %3207 = vrot.lane.b32.xlu0 %v3587_v38, %s3468_s2 }
 0x48a   :  { %v492_v34 = vpop.xlane.xlu0 %491 }
 0x48b   :  { %3294 = vrcp.f32 %v492_v34  ;;  %v489_v36 = vpop.xlane.xlu1 %488 }
 0x48c   :  { %3296 = vrcp.f32 %v489_v36 }
 0x48f   :  { %v495_v37 = vpop.xlane.xlu0 %494 }
 0x490   :  { %3298 = vrcp.f32 %v495_v37  ;;  %v498_v39 = vpop.xlane.xlu1 %497 }
 0x491   :  { %3300 = vrcp.f32 %v498_v39 }
 0x493   :  { %v3208_v40 = vpop.permute.xlu0 %3207 }
 0x494   :  { %v3210_v41 = vunpack.i.h.bf16 %v3208_v40  ;;  %v3209_v42 = vunpack.i.l.bf16 %v3208_v40  ;;  %v3213_v47 = vpop.permute.xlu1 %3212 }
 0x495   :  { %v3295_v48 = vpop.eup %3294  ;;  %v3215_v49 = vunpack.i.h.bf16 %v3213_v47  ;;  %v3214_v50 = vunpack.i.l.bf16 %v3213_v47 }
 0x496   :  { %v3297_v51 = vpop.eup %3296  ;;  %v504_v52 = vmul.f32 %v3295_v48, %v3287_v21  ;;  %v3049_v53 = vpack.c.bf16 %v3210_v41, %v3209_v42 }
 0x497   :  { %v503_v54 = vmul.f32 %v3297_v51, %v3289_v22  ;;  %v3053_v60 = vpack.c.bf16 %v3215_v49, %v3214_v50 }
 0x498   :  { %v3218_v58 = vpop.permute.xlu1 %3217  ;;  %513 = vrot.lane.b32.xlu1 %v504_v52, %s3468_s2  ;;  %3050 = vmatprep.subr.bf16.mxu1 %v3049_v53 }
 0x499   :  { %v3220_v61 = vunpack.i.h.bf16 %v3218_v58  ;;  %v3219_v62 = vunpack.i.l.bf16 %v3218_v58  ;;  %3052 = vmatpush3.bf16.msra.mxu1 %v3049_v53  ;;  %511 = vrot.lane.b32.xlu0 %v503_v54, %s3468_s2 }
 0x49a   :  { %v3299_v63 = vpop.eup %3298  ;;  %3054 = vmatprep.subr.bf16.mxu1 %v3053_v60 }
 0x49b   :  { %v505_v2 = vmul.f32 %v3299_v63, %v3291_v23  ;;  %v3301_v3 = vpop.eup %3300  ;;  %v3057_v4 = vpack.c.bf16 %v3220_v61, %v3219_v62 }
 0x49c   :  { %v506_v5 = vmul.f32 %v3301_v3, %v3293_v24 }
 0x49d   :  { %515 = vrot.lane.b32.xlu1 %v505_v2, %s3468_s2  ;;  %3222 = vrot.lane.b32.xlu0 %v3593_v43, %s3470_s30 }
 0x49e   :  { %3056 = vmatpush3.bf16.msra.mxu1 %v3053_v60 }
 0x49f   :  { %3059 = vmatprep.subr.msk.bf16.mxu1 %vm3583_vm2, %v3057_v4 }
 0x4a1   :  { %624 = vrot.lane.b32.xlu1 %v3577_v27, %s3470_s30  ;;  %517 = vrot.lane.b32.xlu0 %v506_v5, %s3468_s2 }
 0x4a5   :  { %628 = vrot.lane.b32.xlu1 %v3601_v45, %s3470_s30  ;;  %626 = vrot.lane.b32.xlu0 %v3599_v44, %s3470_s30 }
 0x4a9   :  { %3227 = vrot.lane.b32.xlu1 %v3587_v38, %s3471_s5  ;;  %630 = vrot.lane.b32.xlu0 %v3607_v46, %s3470_s30 }
 0x4ad   :  { %1142 = vrot.lane.b32.xlu1 %v3577_v27, %s3471_s5  ;;  %3232 = vrot.lane.b32.xlu0 %v3593_v43, %s3471_s5 }
 0x4b1   :  { %1146 = vrot.lane.b32.xlu1 %v3601_v45, %s3471_s5  ;;  %1144 = vrot.lane.b32.xlu0 %v3599_v44, %s3471_s5 }
 0x4b5   :  { %1148 = vrot.lane.b32.xlu0 %v3607_v46, %s3471_s5 }
 0x50a   :  { %v514_v6 = vpop.permute.xlu1 %513 }
 0x50b   :  { %v512_v7 = vpop.permute.xlu0 %511 }
 0x50c   :  { %2821 = vmatprep.mubr.msk.f32.mxu1 %vm97_vm0, %v512_v7 }
 0x50d   :  { %2822 = vmatmul.mubr.msk.f32.vlgmr.msra.gmra.mrb[8].mxu1 %vm97_vm0, %v514_v6 }
 0x50e   :  { %3062 = vmatpush3.bf16.xpose.msk.msra.mxu1 %vm3583_vm2, %v3057_v4 }
 0x50f   :  { %v3223_v8 = vpop.permute.xlu0 %3222  ;;  %v516_v9 = vpop.permute.xlu1 %515 }
 0x510   :  { %v3225_v10 = vunpack.i.h.bf16 %v3223_v8  ;;  %v3224_v11 = vunpack.i.l.bf16 %v3223_v8  ;;  %2824 = vmatprep.mubr.msk.f32.mxu1 %vm97_vm0, %v516_v9 }
 0x512   :  { %v3063_v12 = vpack.c.bf16 %v3225_v10, %v3224_v11 }
 0x513   :  { %v518_v13 = vpop.permute.xlu0 %517  ;;  %v625_v14 = vpop.permute.xlu1 %624 }
 0x514   :  { %2825 = vmatmul.mubr.msk.f32.gmra.mrb[10].mxu1 %vm97_vm0, %v518_v13  ;;  %3065 = vmatprep.subr.msk.bf16.mxu1 %vm3583_vm2, %v3063_v12 }
 0x515   :  { %2835 = vmatprep.mubr.msk.f32.mxu1 %vm312_vm1, %v625_v14 }
 0x516   :  { %3068 = vmatpush3.bf16.xpose.msk.msra.mxu1 %vm3583_vm2, %v3063_v12 }
 0x517   :  { %v627_v15 = vpop.permute.xlu0 %626  ;;  %v629_v16 = vpop.permute.xlu1 %628 }
 0x51b   :  { %v631_v17 = vpop.permute.xlu0 %630  ;;  %v3228_v18 = vpop.permute.xlu1 %3227 }
 0x51c   :  { %v3230_v19 = vunpack.i.h.bf16 %v3228_v18  ;;  %v3229_v20 = vunpack.i.l.bf16 %v3228_v18 }
 0x51d   :  { %2836 = vmatmul.mubr.msk.f32.vlgmr.msra.gmra.mrb[12].mxu1 %vm312_vm1, %v627_v15 }
 0x51e   :  { %v3077_v21 = vpack.c.bf16 %v3230_v19, %v3229_v20  ;;  %2838 = vmatprep.mubr.msk.f32.mxu1 %vm312_vm1, %v629_v16 }
 0x51f   :  { %v3233_v22 = vpop.permute.xlu0 %3232  ;;  %v1143_v23 = vpop.permute.xlu1 %1142 }
 0x520   :  { %v3235_v24 = vunpack.i.h.bf16 %v3233_v22  ;;  %v3234_v25 = vunpack.i.l.bf16 %v3233_v22  ;;  %3079 = vmatprep.subr.msk.bf16.mxu1 %vm3583_vm2, %v3077_v21 }
 0x521   :  { %2839 = vmatmul.mubr.msk.f32.gmra.mrb[14].mxu1 %vm312_vm1, %v631_v17 }
 0x522   :  { %v3083_v26 = vpack.c.bf16 %v3235_v24, %v3234_v25  ;;  %3082 = vmatpush3.bf16.xpose.msk.msra.mxu1 %vm3583_vm2, %v3077_v21  ;;  %2879 = vmatprep.mubr.msk.f32.mxu1 %vm312_vm1, %v1143_v23 }
 0x523   :  { %v1145_v28 = vpop.permute.xlu0 %1144  ;;  %v1147_v29 = vpop.permute.xlu1 %1146 }
 0x524   :  { %3085 = vmatprep.subr.msk.bf16.mxu1 %vm3583_vm2, %v3083_v26 }
 0x527   :  { %v1149_v30 = vpop.permute.xlu0 %1148 }
 0x52a   :  { %3088 = vmatpush3.bf16.xpose.msk.msra.mxu1 %vm3583_vm2, %v3083_v26 }
 0x531   :  { %2880 = vmatmul.mubr.msk.f32.vlgmr.msra.gmra.mrb[16].mxu1 %vm312_vm1, %v1145_v28 }
 0x532   :  { %2882 = vmatprep.mubr.msk.f32.mxu1 %vm312_vm1, %v1147_v29 }
 0x535   :  { %2883 = vmatmul.mubr.msk.f32.gmra.mrb[18].mxu1 %vm312_vm1, %v1149_v30 }
 0x5e0   :  { %v3701_v31 = vpop.f32.mrb[8].mxu1 }
 0x5e1   :  { %v3703_v32 = vpop.f32.mrb[9].mxu1 }
 0x5e7   :  { %v3705_v33 = vpop.f32.mrb[10].mxu1 }
 0x5e8   :  { %v3707_v34 = vpop.f32.mrb[11].mxu1 }
 0x5f0   :  { %v2837_v36 = vpop.f32.mrb[12].mxu1 }
 0x5f1   :  { %v742_v37 = vmul.f32 0.35355338, %v2837_v36  ;;  %v722_v39 = vpop.f32.mrb[13].mxu1 }
 0x5f2   :  { %v741_v40 = vmul.f32 0.35355338, %v722_v39 }
 0x5f3   :  { %751 = vrot.lane.b32.xlu0 %v742_v37, %s3469_s29 }
 0x5f4   :  { %749 = vrot.lane.b32.xlu1 %v741_v40, %s3469_s29  ;;  %v2840_v41 = vpop.f32.mrb[14].mxu1 }
 0x5f5   :  { %v744_v42 = vmul.f32 0.35355338, %v2840_v41  ;;  %v732_v47 = vpop.f32.mrb[15].mxu1 }
 0x5f6   :  { %v743_v48 = vmul.f32 0.35355338, %v732_v47 }
 0x5f7   :  { %755 = vrot.lane.b32.xlu0 %v744_v42, %s3469_s29 }
 0x5f8   :  { %753 = vrot.lane.b32.xlu1 %v743_v48, %s3469_s29 }
 0x604   :  { %v2881_v49 = vpop.f32.mrb[16].mxu1 }
 0x605   :  { %v1240_v50 = vpop.f32.mrb[17].mxu1  ;;  %v1260_v23 = vmul.f32 0.35355338, %v2881_v49 }
 0x606   :  { %v1259_v24 = vmul.f32 0.35355338, %v1240_v50 }
 0x608   :  { %v2884_v51 = vpop.f32.mrb[18].mxu1 }
 0x609   :  { %v1250_v52 = vpop.f32.mrb[19].mxu1  ;;  %v1262_v26 = vmul.f32 0.35355338, %v2884_v51 }
 0x60a   :  { %v1261_v25 = vmul.f32 0.35355338, %v1250_v52 }
 0x665   :  { %v752_v53 = vpop.permute.xlu0 %751 }
 0x666   :  { %v762_v54 = vsel %vm90_vm3, %v752_v53, -1e+30  ;;  %v750_v58 = vpop.permute.xlu1 %749 }
 0x667   :  { %v761_v60 = vsel %vm89_vm5, %v750_v58, -1e+30  ;;  %v768_v61 = vsel %vm446_vm4, %v762_v54, -inf }
 0x668   :  { %769 = vmax.xlane.f32.xlu0 %v768_v61  ;;  %v765_v62 = vsel %vm446_vm4, %v761_v60, -inf }
 0x669   :  { %v756_v63 = vpop.permute.xlu0 %755  ;;  %766 = vmax.xlane.f32.xlu1 %v765_v62 }
 0x66a   :  { %v764_v2 = vsel %vm92_vm6, %v756_v63, -1e+30  ;;  %v754_v3 = vpop.permute.xlu1 %753 }
 0x66b   :  { %v763_v4 = vsel %vm91_vm7, %v754_v3, -1e+30  ;;  %v774_v5 = vsel %vm446_vm4, %v764_v2, -inf }
 0x66c   :  { %v771_v6 = vsel %vm446_vm4, %v763_v4, -inf }
 0x66d   :  { %775 = vmax.xlane.f32.xlu1 %v774_v5  ;;  %772 = vmax.xlane.f32.xlu0 %v771_v6 }
 0x6f5   :  { %v770_v7 = vpop.xlane.xlu0 %769 }
 0x6f6   :  { %v778_v8 = vsub.f32 %v762_v54, %v770_v7  ;;  %v767_v9 = vpop.xlane.xlu1 %766 }
 0x6f7   :  { %v777_v10 = vsub.f32 %v761_v60, %v767_v9 }
 0x6f8   :  { %v783_v11 = vmul.f32 1.442695, %v778_v8 }
 0x6f9   :  { %v781_v12 = vmul.f32 1.442695, %v777_v10 }
 0x6fa   :  { %3302 = vpow2.f32 %v783_v11  ;;  %v773_v13 = vpop.xlane.xlu0 %772  ;;  %v776_v14 = vpop.xlane.xlu1 %775 }
 0x6fb   :  { %3304 = vpow2.f32 %v781_v12  ;;  %v779_v15 = vsub.f32 %v763_v4, %v773_v13  ;;  %v780_v16 = vsub.f32 %v764_v2, %v776_v14 }
 0x6fd   :  { %v785_v17 = vmul.f32 1.442695, %v779_v15  ;;  %v787_v18 = vmul.f32 1.442695, %v780_v16 }
 0x6ff   :  { %3306 = vpow2.f32 %v785_v17 }
 0x700   :  { %3308 = vpow2.f32 %v787_v18 }
 0x704   :  { %v3725_v19 = vpop.eup %3302 }
 0x705   :  { %v3727_v20 = vpop.eup %3304  ;;  %795 = vrot.lane.b32.xlu1 %v3725_v19, %s3468_s2 }
 0x706   :  { %793 = vrot.lane.b32.xlu0 %v3727_v20, %s3468_s2 }
 0x709   :  { %v3733_v21 = vpop.eup %3306 }
 0x70a   :  { %v3735_v22 = vpop.eup %3308  ;;  %797 = vrot.lane.b32.xlu1 %v3733_v21, %s3468_s2 }
 0x70b   :  { %799 = vrot.lane.b32.xlu0 %v3735_v22, %s3468_s2 }
 0x70e   :  { %3237 = vrot.lane.b32.xlu1 %v3587_v38, %s3472_s6 }
 0x70f   :  { %3242 = vrot.lane.b32.xlu0 %v3593_v43, %s3472_s6 }
 0x712   :  { %1564 = vrot.lane.b32.xlu1 %v3577_v27, %s3472_s6 }
 0x713   :  { %1566 = vrot.lane.b32.xlu0 %v3599_v44, %s3472_s6 }
 0x716   :  { %1568 = vrot.lane.b32.xlu1 %v3601_v45, %s3472_s6 }
 0x717   :  { %1570 = vrot.lane.b32.xlu0 %v3607_v46, %s3472_s6 }
 0x71a   :  { %1269 = vrot.lane.b32.xlu1 %v1260_v23, %s3469_s29 }
 0x71b   :  { %1267 = vrot.lane.b32.xlu0 %v1259_v24, %s3469_s29 }
 0x71e   :  { %1271 = vrot.lane.b32.xlu1 %v1261_v25, %s3469_s29 }
 0x71f   :  { %1273 = vrot.lane.b32.xlu0 %v1262_v26, %s3469_s29 }
 0x777   :  { %v796_v28 = vpop.permute.xlu1 %795 }
 0x778   :  { %v794_v27 = vpop.permute.xlu0 %793  ;;  %v808_v44 = vsel %vm97_vm0, %v796_v28, 0.0 }
 0x779   :  { %809 = vadd.xlane.f32.xlu0 %v808_v44  ;;  %v805_v45 = vsel %vm97_vm0, %v794_v27, 0.0 }
 0x77a   :  { %806 = vadd.xlane.f32.xlu1 %v805_v45 }
 0x77c   :  { %v798_v46 = vpop.permute.xlu1 %797 }
 0x77d   :  { %v800_v29 = vpop.permute.xlu0 %799  ;;  %v811_v30 = vsel %vm97_vm0, %v798_v46, 0.0 }
 0x77e   :  { %v814_v36 = vsel %vm97_vm0, %v800_v29, 0.0  ;;  %812 = vadd.xlane.f32.xlu0 %v811_v30 }
 0x77f   :  { %815 = vadd.xlane.f32.xlu1 %v814_v36 }
 0x780   :  { %v3238_v37 = vpop.permute.xlu1 %3237 }
 0x781   :  { %v3243_v39 = vpop.permute.xlu0 %3242  ;;  %v3240_v40 = vunpack.i.h.bf16 %v3238_v37  ;;  %v3239_v41 = vunpack.i.l.bf16 %v3238_v37 }
 0x782   :  { %v3245_v42 = vunpack.i.h.bf16 %v3243_v39  ;;  %v3244_v47 = vunpack.i.l.bf16 %v3243_v39 }
 0x783   :  { %v3097_v48 = vpack.c.bf16 %v3240_v40, %v3239_v41 }
 0x784   :  { %v1565_v49 = vpop.permute.xlu1 %1564  ;;  %v3103_v50 = vpack.c.bf16 %v3245_v42, %v3244_v47 }
 0x785   :  { %3099 = vmatprep.subr.msk.bf16.mxu1 %vm3583_vm2, %v3097_v48  ;;  %2915 = vmatprep.mubr.msk.f32.mxu1 %vm312_vm1, %v1565_v49  ;;  %v1567_v51 = vpop.permute.xlu0 %1566 }
 0x786   :  { %3102 = vmatpush3.bf16.xpose.msk.msra.mxu1 %vm3583_vm2, %v3097_v48 }
 0x787   :  { %3105 = vmatprep.subr.msk.bf16.mxu1 %vm3583_vm2, %v3103_v50 }
 0x788   :  { %v1569_v52 = vpop.permute.xlu1 %1568 }
 0x789   :  { %v1571_v53 = vpop.permute.xlu0 %1570 }
 0x78c   :  { %v1270_v54 = vpop.permute.xlu1 %1269 }
 0x78d   :  { %v1268_v58 = vpop.permute.xlu0 %1267  ;;  %v1280_v35 = vsel %vm90_vm3, %v1270_v54, -1e+30 }
 0x78e   :  { %3108 = vmatpush3.bf16.xpose.msk.msra.mxu1 %vm3583_vm2, %v3103_v50  ;;  %v1279_v60 = vsel %vm89_vm5, %v1268_v58, -1e+30  ;;  %v1286_v62 = vsel %vm446_vm4, %v1280_v35, -inf }
 0x78f   :  { %v1283_v2 = vsel %vm446_vm4, %v1279_v60, -inf }
 0x790   :  { %3247 = vrot.lane.b32.xlu1 %v3587_v38, %s3473_s7  ;;  %v1272_v61 = vpop.permute.xlu1 %1271 }
 0x791   :  { %v1281_v63 = vsel %vm91_vm7, %v1272_v61, -1e+30  ;;  %v1274_v4 = vpop.permute.xlu0 %1273 }
 0x792   :  { %v1289_v3 = vsel %vm446_vm4, %v1281_v63, -inf }
 0x794   :  { %3252 = vrot.lane.b32.xlu0 %v3593_v43, %s3473_s7 }
 0x795   :  { %2916 = vmatmul.mubr.msk.f32.vlgmr.msra.gmra.mrb[20].mxu1 %vm312_vm1, %v1567_v51 }
 0x796   :  { %2918 = vmatprep.mubr.msk.f32.mxu1 %vm312_vm1, %v1569_v52 }
 0x799   :  { %2919 = vmatmul.mubr.msk.f32.gmra.mrb[22].mxu1 %vm312_vm1, %v1571_v53 }
 0x7b3   :  { %1287 = vmax.xlane.f32.xlu0 %v1286_v62 }
 0x7b4   :  { %1284 = vmax.xlane.f32.xlu1 %v1283_v2 }
 0x7b7   :  { %1290 = vmax.xlane.f32.xlu0 %v1289_v3 }
 0x806   :  { %v810_v5 = vpop.xlane.xlu0 %809 }
 0x807   :  { %3310 = vrcp.f32 %v810_v5  ;;  %v807_v6 = vpop.xlane.xlu1 %806 }
 0x808   :  { %3312 = vrcp.f32 %v807_v6 }
 0x80b   :  { %v813_v7 = vpop.xlane.xlu0 %812 }
 0x80c   :  { %3314 = vrcp.f32 %v813_v7  ;;  %v816_v8 = vpop.xlane.xlu1 %815 }
 0x80d   :  { %3316 = vrcp.f32 %v816_v8 }
 0x80f   :  { %v3253_v9 = vpop.permute.xlu0 %3252 }
 0x810   :  { %v3248_v10 = vpop.permute.xlu1 %3247  ;;  %v3255_v12 = vunpack.i.h.bf16 %v3253_v9  ;;  %v3254_v13 = vunpack.i.l.bf16 %v3253_v9 }
 0x811   :  { %v3311_v11 = vpop.eup %3310  ;;  %v3250_v14 = vunpack.i.h.bf16 %v3248_v10  ;;  %v3249_v15 = vunpack.i.l.bf16 %v3248_v10 }
 0x812   :  { %v3313_v16 = vpop.eup %3312  ;;  %v822_v17 = vmul.f32 %v3311_v11, %v3725_v19  ;;  %v3073_v24 = vpack.c.bf16 %v3255_v12, %v3254_v13 }
 0x813   :  { %v3069_v18 = vpack.c.bf16 %v3250_v14, %v3249_v15  ;;  %v821_v23 = vmul.f32 %v3313_v16, %v3727_v20  ;;  %v1282_v20 = vsel %vm92_vm6, %v1274_v4, -1e+30 }
 0x814   :  { %831 = vrot.lane.b32.xlu1 %v822_v17, %s3468_s2  ;;  %v1292_v27 = vsel %vm446_vm4, %v1282_v20, -inf }
 0x815   :  { %3070 = vmatprep.subr.bf16.mxu0 %v3069_v18  ;;  %829 = vrot.lane.b32.xlu0 %v821_v23, %s3468_s2 }
 0x816   :  { %v3315_v25 = vpop.eup %3314  ;;  %3072 = vmatpush3.bf16.msra.mxu0 %v3069_v18 }
 0x817   :  { %3074 = vmatprep.subr.bf16.mxu0 %v3073_v24  ;;  %v823_v26 = vmul.f32 %v3315_v25, %v3733_v21  ;;  %v3317_v28 = vpop.eup %3316 }
 0x818   :  { %v824_v19 = vmul.f32 %v3317_v28, %v3735_v22 }
 0x819   :  { %833 = vrot.lane.b32.xlu0 %v823_v26, %s3468_s2 }
 0x81a   :  { %3076 = vmatpush3.bf16.msra.mxu0 %v3073_v24 }
 0x81d   :  { %835 = vrot.lane.b32.xlu0 %v824_v19, %s3468_s2 }
 0x838   :  { %1293 = vmax.xlane.f32.xlu1 %v1292_v27 }
 0x840   :  { %v1288_v44 = vpop.xlane.xlu0 %1287 }
 0x841   :  { %v1285_v45 = vpop.xlane.xlu1 %1284  ;;  %v1296_v46 = vsub.f32 %v1280_v35, %v1288_v44 }
 0x842   :  { %v1295_v29 = vsub.f32 %v1279_v60, %v1285_v45 }
 0x843   :  { %v1301_v36 = vmul.f32 1.442695, %v1296_v46 }
 0x844   :  { %v1299_v30 = vmul.f32 1.442695, %v1295_v29  ;;  %v1291_v21 = vpop.xlane.xlu0 %1290 }
 0x845   :  { %v1297_v37 = vsub.f32 %v1281_v63, %v1291_v21 }
 0x846   :  { %3318 = vpow2.f32 %v1299_v30 }
 0x847   :  { %3320 = vpow2.f32 %v1301_v36  ;;  %v1303_v39 = vmul.f32 1.442695, %v1297_v37 }
 0x849   :  { %3322 = vpow2.f32 %v1303_v39 }
 0x850   :  { %v3789_v22 = vpop.eup %3318 }
 0x851   :  { %1311 = vrot.lane.b32.xlu0 %v3789_v22, %s3468_s2  ;;  %v3793_v40 = vpop.eup %3320 }
 0x853   :  { %v3797_v41 = vpop.eup %3322 }
 0x855   :  { %1313 = vrot.lane.b32.xlu0 %v3793_v40, %s3468_s2 }
 0x859   :  { %1315 = vrot.lane.b32.xlu0 %v3797_v41, %s3468_s2 }
 0x868   :  { %v2917_v42 = vpop.f32.mrb[20].mxu1 }
 0x869   :  { %v1662_v47 = vpop.f32.mrb[21].mxu1  ;;  %v1682_v5 = vmul.f32 0.35355338, %v2917_v42 }
 0x86a   :  { %v1681_v8 = vmul.f32 0.35355338, %v1662_v47 }
 0x86c   :  { %v2920_v48 = vpop.f32.mrb[22].mxu1 }
 0x86d   :  { %v1672_v49 = vpop.f32.mrb[23].mxu1  ;;  %v1684_v12 = vmul.f32 0.35355338, %v2920_v48 }
 0x86e   :  { %v1683_v9 = vmul.f32 0.35355338, %v1672_v49 }
 0x886   :  { %v832_v51 = vpop.permute.xlu1 %831 }
 0x887   :  { %v830_v50 = vpop.permute.xlu0 %829 }
 0x888   :  { %2849 = vmatprep.mubr.msk.f32.mxu0 %vm97_vm0, %v830_v50 }
 0x889   :  { %2850 = vmatmul.mubr.msk.f32.vlgmr.msra.gmra.mrb[4].mxu0 %vm97_vm0, %v832_v51 }
 0x88b   :  { %v834_v52 = vpop.permute.xlu0 %833 }
 0x88c   :  { %2852 = vmatprep.mubr.msk.f32.mxu0 %vm97_vm0, %v834_v52 }
 0x88f   :  { %v836_v53 = vpop.permute.xlu0 %835 }
 0x890   :  { %2853 = vmatmul.mubr.msk.f32.gmra.mrb[6].mxu0 %vm97_vm0, %v836_v53 }
 0x8c3   :  { %v1312_v54 = vpop.permute.xlu0 %1311 }
 0x8c4   :  { %v1323_v4 = vsel %vm97_vm0, %v1312_v54, 0.0 }
 0x8c5   :  { %v1294_v58 = vpop.xlane.xlu1 %1293 }
 0x8c6   :  { %v1298_v35 = vsub.f32 %v1282_v20, %v1294_v58 }
 0x8c7   :  { %v1314_v60 = vpop.permute.xlu0 %1313 }
 0x8c8   :  { %v1305_v61 = vmul.f32 1.442695, %v1298_v35  ;;  %v1326_v62 = vsel %vm97_vm0, %v1314_v60, 0.0 }
 0x8c9   :  { %1327 = vadd.xlane.f32.xlu1 %v1326_v62 }
 0x8ca   :  { %3324 = vpow2.f32 %v1305_v61 }
 0x8cb   :  { %v1316_v63 = vpop.permute.xlu0 %1315 }
 0x8cc   :  { %v1329_v2 = vsel %vm97_vm0, %v1316_v63, 0.0 }
 0x8cd   :  { %1330 = vadd.xlane.f32.xlu1 %v1329_v2 }
 0x8d4   :  { %v3807_v3 = vpop.eup %3324 }
 0x8d5   :  { %1317 = vrot.lane.b32.xlu0 %v3807_v3, %s3468_s2 }
 0x8f4   :  { %1324 = vadd.xlane.f32.xlu0 %v1323_v4 }
 0x90a   :  { %1691 = vrot.lane.b32.xlu0 %v1682_v5, %s3469_s29 }
 0x947   :  { %v1318_v6 = vpop.permute.xlu0 %1317 }
 0x948   :  { %v1332_v7 = vsel %vm97_vm0, %v1318_v6, 0.0 }
 0x949   :  { %1333 = vadd.xlane.f32.xlu1 %v1332_v7 }
 0x956   :  { %v1328_v23 = vpop.xlane.xlu1 %1327 }
 0x95a   :  { %1689 = vrot.lane.b32.xlu1 %v1681_v8, %s3469_s29  ;;  %v1331_v24 = vpop.xlane.xlu1 %1330 }
 0x95c   :  { %v2851_v10 = vpop.f32.mrb[4].mxu0 }
 0x95d   :  { %v923_v11 = vpop.f32.mrb[5].mxu0 }
 0x95e   :  { %2857 = vmatprep.mubr.msk.f32.mxu0 %vm312_vm1, %v923_v11  ;;  %1693 = vrot.lane.b32.xlu1 %v1683_v9, %s3469_s29 }
 0x962   :  { %1695 = vrot.lane.b32.xlu1 %v1684_v12, %s3469_s29 }
 0x963   :  { %v2854_v13 = vpop.f32.mrb[6].mxu0 }
 0x964   :  { %v933_v14 = vpop.f32.mrb[7].mxu0 }
 0x966   :  { %942 = vrot.lane.b32.xlu1 %v3557_v1, %s3469_s29 }
 0x96a   :  { %1042 = vrot.lane.b32.xlu1 %v3555_v0, %s3469_s29 }
 0x96e   :  { %3257 = vrot.lane.b32.xlu1 %v3587_v38, %s3474_s8 }
 0x981   :  { %v1325_v15 = vpop.xlane.xlu0 %1324 }
 0x982   :  { %3326 = vrcp.f32 %v1325_v15  ;;  %v3358_v15 = vld [vmem:[#allocation7 + $0x10] sm:$0xff] }
 0x983   :  { %3328 = vrcp.f32 %v1328_v23 }
 0x984   :  { %3330 = vrcp.f32 %v1331_v24 }
 0x985   :  { %v1692_v16 = vpop.permute.xlu0 %1691 }
 0x986   :  { %v1702_v17 = vsel %vm90_vm3, %v1692_v16, -1e+30 }
 0x987   :  { %v1708_v18 = vsel %vm446_vm4, %v1702_v17, -inf }
 0x98c   :  { %v3327_v29 = vpop.eup %3326 }
 0x98d   :  { %v3329_v21 = vpop.eup %3328 }
 0x98e   :  { %v1340_v36 = vmul.f32 %v3329_v21, %v3793_v40  ;;  %v3331_v37 = vpop.eup %3330 }
 0x992   :  { %1709 = vmax.xlane.f32.xlu1 %v1708_v18 }
 0x9d6   :  { %v1334_v25 = vpop.xlane.xlu1 %1333 }
 0x9d7   :  { %3332 = vrcp.f32 %v1334_v25 }
 0x9da   :  { %v1690_v26 = vpop.permute.xlu1 %1689 }
 0x9db   :  { %v1701_v1 = vsel %vm89_vm5, %v1690_v26, -1e+30 }
 0x9dc   :  { %v1705_v0 = vsel %vm446_vm4, %v1701_v1, -inf }
 0x9dd   :  { %1706 = vmax.xlane.f32.xlu0 %v1705_v0 }
 0x9de   :  { %v1694_v28 = vpop.permute.xlu1 %1693 }
 0x9df   :  { %v1703_v19 = vsel %vm91_vm7, %v1694_v28, -1e+30 }
 0x9e0   :  { %v1711_v55 = vsel %vm446_vm4, %v1703_v19, -inf }
 0x9e1   :  { %1712 = vmax.xlane.f32.xlu1 %v1711_v55 }
 0x9e2   :  { %v1696_v20 = vpop.permute.xlu1 %1695 }
 0x9e3   :  { %v1704_v27 = vsel %vm92_vm6, %v1696_v20, -1e+30 }
 0x9e4   :  { %v1714_v44 = vsel %vm446_vm4, %v1704_v27, -inf }
 0x9e5   :  { %1715 = vmax.xlane.f32.xlu1 %v1714_v44 }
 0x9e6   :  { %v943_v45 = vpop.permute.xlu1 %942 }
 0x9e7   :  { %2855 = vmatprep.subr.mxu0 %v943_v45 }
 0x9e8   :  { %2856 = vmatpush3.msra.mxu0 %v943_v45 }
 0x9e9   :  { %2858 = vmatmul.mubr.msk.f32.vlgmr.msra.gmra.mrb[8].mxu0 %vm312_vm1, %v2851_v10 }
 0x9ea   :  { %2860 = vmatprep.mubr.msk.f32.mxu0 %vm312_vm1, %v933_v14  ;;  %v1043_v56 = vpop.permute.xlu1 %1042 }
 0x9eb   :  { %2863 = vmatprep.subr.mxu0 %v1043_v56 }
 0x9ec   :  { %2864 = vmatpush3.msra.mxu0 %v1043_v56 }
 0x9ed   :  { %2861 = vmatmul.mubr.msk.f32.gmra.mrb[10].mxu0 %vm312_vm1, %v2854_v13 }
 0x9ee   :  { %2865 = vmatprep.mubr.msk.f32.mxu0 %vm312_vm1, %v3703_v32  ;;  %v3258_v57 = vpop.permute.xlu1 %3257  ;;  %v1339_v32 = vmul.f32 %v3327_v29, %v3789_v22 }
 0x9ef   :  { %v3260_v59 = vunpack.i.h.bf16 %v3258_v57  ;;  %v3259_v46 = vunpack.i.l.bf16 %v3258_v57 }
 0x9f1   :  { %v3089_v30 = vpack.c.bf16 %v3260_v59, %v3259_v46  ;;  %2866 = vmatmul.mubr.msk.f32.vlgmr.msra.gmra.mrb[8].mxu0 %vm312_vm1, %v3701_v31  ;;  %v1341_v31 = vmul.f32 %v3331_v37, %v3797_v41 }
 0x9f2   :  { %2868 = vmatprep.mubr.msk.f32.mxu0 %vm312_vm1, %v3707_v34  ;;  %v3333_v34 = vpop.eup %3332 }
 0x9f3   :  { %3262 = vrot.lane.b32.xlu0 %v3593_v43, %s3474_s8  ;;  %3090 = vmatprep.subr.bf16.mxu0 %v3089_v30  ;;  %v1342_v39 = vmul.f32 %v3333_v34, %v3807_v3 }
 0x9f4   :  { %3092 = vmatpush3.bf16.msra.mxu0 %v3089_v30 }
 0x9f5   :  { %2869 = vmatmul.mubr.msk.f32.gmra.mrb[10].mxu0 %vm312_vm1, %v3705_v33 }
 0x9f6   :  { %1347 = vrot.lane.b32.xlu1 %v1339_v32, %s3468_s2  ;;  %v3359_v32 = vld [vmem:[#allocation7 + $0x18] sm:$0xff] }
 0x9f7   :  { %1349 = vrot.lane.b32.xlu0 %v1340_v36, %s3468_s2 }
 0x9fb   :  { %1351 = vrot.lane.b32.xlu0 %v1341_v31, %s3468_s2 }
 0x9ff   :  { %1353 = vrot.lane.b32.xlu0 %v1342_v39, %s3468_s2 }
 0xa1f   :  { %v1710_v22 = vpop.xlane.xlu1 %1709 }
 0xa20   :  { %v1718_v42 = vsub.f32 %v1702_v17, %v1710_v22  ;;  %v71_v22 = vld [vmem:[#allocation7 + $0x20] sm:$0xff] }
 0xa22   :  { %v1723_v47 = vmul.f32 1.442695, %v1718_v42  ;;  %v72_v42 = vld [vmem:[#allocation7 + $0x28] sm:$0xff] }
 0xa24   :  { %3334 = vpow2.f32 %v1723_v47  ;;  %v73_v47 = vld [vmem:[#allocation7 + $0x30] sm:$0xff] }
 0xa2e   :  { %v3335_v33 = vpop.eup %3334 }
 0xa2f   :  { %1735 = vrot.lane.b32.xlu0 %v3335_v33, %s3468_s2 }
 0xa6a   :  { %v1707_v40 = vpop.xlane.xlu0 %1706 }
 0xa6b   :  { %v1717_v48 = vsub.f32 %v1701_v1, %v1707_v40  ;;  %v74_v40 = vld [vmem:[#allocation7 + $0x38] sm:$0xff] }
 0xa6d   :  { %v1721_v49 = vmul.f32 1.442695, %v1717_v48  ;;  %v3281_v48 = vpack.i.bf16 %v74_v40, %v73_v47 }
 0xa6e   :  { %v3263_v50 = vpop.permute.xlu0 %3262  ;;  %v1713_v51 = vpop.xlane.xlu1 %1712 }
 0xa6f   :  { %3336 = vpow2.f32 %v1721_v49  ;;  %v3265_v41 = vunpack.i.h.bf16 %v3263_v50  ;;  %v3264_v52 = vunpack.i.l.bf16 %v3263_v50  ;;  %v1719_v53 = vsub.f32 %v1703_v19, %v1713_v51  ;;  %v3360_v49 = vld [vmem:[%s3941_s3] ss:$0 sm:$0xff]  ;;  %v3362_v51 = vld [vmem:[#allocation7 + $0x48] sm:$0xff] }
 0xa70   :  { %v3361_v50 = vld [vmem:[#allocation7 + $0x40] sm:$0xff] }
 0xa71   :  { %v3093_v54 = vpack.c.bf16 %v3265_v41, %v3264_v52  ;;  %v1725_v58 = vmul.f32 1.442695, %v1719_v53  ;;  %v3363_v41 = vld [vmem:[#allocation7 + $0x50] sm:$0xff]  ;;  %v3364_v52 = vld [vmem:[#allocation7 + $0x58] sm:$0xff] }
 0xa72   :  { %v1350_v35 = vpop.permute.xlu0 %1349  ;;  %v1716_v60 = vpop.xlane.xlu1 %1715 }
 0xa73   :  { %3338 = vpow2.f32 %v1725_v58  ;;  %v1720_v61 = vsub.f32 %v1704_v27, %v1716_v60  ;;  %3094 = vmatprep.subr.bf16.mxu0 %v3093_v54 }
 0xa74   :  { %3096 = vmatpush3.bf16.msra.mxu0 %v3093_v54 }
 0xa75   :  { %v1727_v62 = vmul.f32 1.442695, %v1720_v61 }
 0xa76   :  { %v1352_v63 = vpop.permute.xlu0 %1351  ;;  %v1348_v2 = vpop.permute.xlu1 %1347 }
 0xa77   :  { %3340 = vpow2.f32 %v1727_v62  ;;  %2893 = vmatprep.mubr.msk.f32.mxu0 %vm97_vm0, %v1348_v2 }
 0xa78   :  { %2894 = vmatmul.mubr.msk.f32.vlgmr.msra.gmra.mrb[12].mxu0 %vm97_vm0, %v1350_v35 }
 0xa79   :  { %v3337_v3 = vpop.eup %3336  ;;  %2896 = vmatprep.mubr.msk.f32.mxu0 %vm97_vm0, %v1352_v63 }
 0xa7a   :  { %v1354_v4 = vpop.permute.xlu0 %1353  ;;  %1733 = vrot.lane.b32.xlu1 %v3337_v3, %s3468_s2 }
 0xa7c   :  { %2897 = vmatmul.mubr.msk.f32.gmra.mrb[14].mxu0 %vm97_vm0, %v1354_v4 }
 0xa7d   :  { %v3339_v5 = vpop.eup %3338 }
 0xa7e   :  { %1737 = vrot.lane.b32.xlu1 %v3339_v5, %s3468_s2 }
 0xa81   :  { %v3341_v6 = vpop.eup %3340 }
 0xa82   :  { %1739 = vrot.lane.b32.xlu0 %v3341_v6, %s3468_s2 }
 0xaa1   :  { %v1736_v7 = vpop.permute.xlu0 %1735 }
 0xaa2   :  { %v1748_v8 = vsel %vm97_vm0, %v1736_v7, 0.0  ;;  %v2614_v7 = vld [vmem:[%s3941_s3 + $0x1] ss:$0 sm:$0xff]  ;;  %s3477_s3 = smov [#allocation8]  }
 0xaa3   :  { %1749 = vadd.xlane.f32.xlu0 %v1748_v8  ;;  %s2520_s14 = sshll.u32 %s3477_s3, 4  ;;  %s2521_s14 = int_to_ptr.vmem [resolvable:$true] %s2520_s14 }
 0xaa4   :  { %s3435_s15 = scalar_lea.vmem %s2521_s14, 512  ;;  %p3440_p11 = scmp.lt.s32.totalorder %s2521_s14, %s2521_s14 }
 0xaa5   :  { %p3436_p10 = scmp.ne.s32.totalorder %s2521_s14, %s3435_s15  ;;  %p3441_p12 = scmp.lt.s32.totalorder %s3435_s15, %s3435_s15 }
 0xaa7   :  { %p3442_p13 = por %p3441_p12, %p3440_p11 }
 0xaa9   :  { %p3443_p0 = pnand %p3442_p13, %p3436_p10 }
 0xaec   :  { %v1734_v9 = vpop.permute.xlu1 %1733 }
 0xaed   :  { %v1745_v10 = vsel %vm97_vm0, %v1734_v9, 0.0 }
 0xaee   :  { %1746 = vadd.xlane.f32.xlu1 %v1745_v10 }
 0xaf0   :  { %v1738_v11 = vpop.permute.xlu1 %1737 }
 0xaf1   :  { %v1751_v12 = vsel %vm97_vm0, %v1738_v11, 0.0 }
 0xaf2   :  { %1752 = vadd.xlane.f32.xlu0 %v1751_v12 }
 0xaf4   :  { %v1740_v13 = vpop.permute.xlu0 %1739 }
 0xaf5   :  { %v1754_v14 = vsel %vm97_vm0, %v1740_v13, 0.0  ;;  %v3129_v13 = vpack.c.bf16 %v74_v40, %v73_v47  ;;  %v76_v40 = vld [vmem:[#allocation7 + $0x48] sm:$0xff] }
 0xaf6   :  { %1755 = vadd.xlane.f32.xlu1 %v1754_v14 }
 0xb07   :  { %3267 = vrot.lane.b32.xlu1 %v3587_v38, %s3475_s9 }
 0xb08   :  { %1460 = vrot.lane.b32.xlu0 %v3358_v15, %s3469_s29 }
 0xb0b   :  { %3272 = vrot.lane.b32.xlu1 %v3593_v43, %s3475_s9 }
 0xb30   :  { %v1750_v16 = vpop.xlane.xlu0 %1749 }
 0xb31   :  { %3342 = vrcp.f32 %v1750_v16 }
 0xb3b   :  { %v3343_v17 = vpop.eup %3342 }
 0xb3c   :  { %v1762_v18 = vmul.f32 %v3343_v17, %v3335_v33  ;;  %v3276_v33 = vpack.i.bf16 %v72_v42, %v71_v22 }
 0xb3e   :  { %1771 = vrot.lane.b32.xlu1 %v1762_v18, %s3468_s2  ;;  %v3365_v18 = vld [vmem:[#allocation2] sm:$0xff] }
 0xb4b   :  { %v2895_v23 = vpop.f32.mrb[12].mxu0 }
 0xb4c   :  { %v1441_v24 = vpop.f32.mrb[13].mxu0 }
 0xb4d   :  { %2901 = vmatprep.mubr.msk.f32.mxu0 %vm312_vm1, %v1441_v24  ;;  %v3367_v24 = vld [vmem:[#allocation2 + $0x10] sm:$0xff] }
 0xb4f   :  { %v2898_v25 = vpop.f32.mrb[14].mxu0 }
 0xb50   :  { %v1451_v26 = vpop.f32.mrb[15].mxu0 }
 0xb7b   :  { %v1747_v1 = vpop.xlane.xlu1 %1746 }
 0xb7c   :  { %3344 = vrcp.f32 %v1747_v1 }
 0xb7f   :  { %v1753_v38 = vpop.xlane.xlu0 %1752 }
 0xb80   :  { %3346 = vrcp.f32 %v1753_v38 }
 0xb83   :  { %v1461_v0 = vpop.permute.xlu0 %1460  ;;  %v1756_v28 = vpop.xlane.xlu1 %1755 }
 0xb84   :  { %3348 = vrcp.f32 %v1756_v28  ;;  %2899 = vmatprep.subr.mxu0 %v1461_v0 }
 0xb85   :  { %2900 = vmatpush3.msra.mxu0 %v1461_v0 }
 0xb86   :  { %v3345_v43 = vpop.eup %3344  ;;  %2902 = vmatmul.mubr.msk.f32.vlgmr.msra.gmra.mrb[8].mxu0 %vm312_vm1, %v2895_v23  ;;  %v3366_v23 = vld [vmem:[#allocation2 + $0x8] sm:$0xff] }
 0xb87   :  { %v3268_v19 = vpop.permute.xlu1 %3267  ;;  %2904 = vmatprep.mubr.msk.f32.mxu0 %vm312_vm1, %v1451_v26  ;;  %v1761_v55 = vmul.f32 %v3345_v43, %v3337_v3 }
 0xb88   :  { %v3270_v20 = vunpack.i.h.bf16 %v3268_v19  ;;  %v3269_v27 = vunpack.i.l.bf16 %v3268_v19 }
 0xb89   :  { %1769 = vrot.lane.b32.xlu0 %v1761_v55, %s3468_s2 }
 0xb8a   :  { %v3347_v44 = vpop.eup %3346  ;;  %v3109_v45 = vpack.c.bf16 %v3270_v20, %v3269_v27  ;;  %2905 = vmatmul.mubr.msk.f32.gmra.mrb[10].mxu0 %vm312_vm1, %v2898_v25  ;;  %v3368_v25 = vld [vmem:[#allocation2 + $0x18] sm:$0xff] }
 0xb8b   :  { %v3273_v56 = vpop.permute.xlu1 %3272  ;;  %v1763_v57 = vmul.f32 %v3347_v44, %v3339_v5 }
 0xb8c   :  { %v3275_v59 = vunpack.i.h.bf16 %v3273_v56  ;;  %v3274_v46 = vunpack.i.l.bf16 %v3273_v56  ;;  %3110 = vmatprep.subr.bf16.mxu0 %v3109_v45 }
 0xb8d   :  { %1773 = vrot.lane.b32.xlu0 %v1763_v57, %s3468_s2  ;;  %3112 = vmatpush3.bf16.msra.mxu0 %v3109_v45 }
 0xb8e   :  { %v3349_v29 = vpop.eup %3348  ;;  %v3113_v30 = vpack.c.bf16 %v3275_v59, %v3274_v46 }
 0xb8f   :  { %v1764_v21 = vmul.f32 %v3349_v29, %v3341_v6  ;;  %v3125_v6 = vpack.c.bf16 %v72_v42, %v71_v22 }
 0xb90   :  { %3114 = vmatprep.subr.bf16.mxu0 %v3113_v30 }
 0xb91   :  { %1775 = vrot.lane.b32.xlu1 %v1764_v21, %s3468_s2  ;;  %3116 = vmatpush3.bf16.msra.mxu0 %v3113_v30 }
 0xb92   :  { %1882 = vrot.lane.b32.xlu0 %v3359_v32, %s3469_s29 }
 0xb95   :  { %3277 = vrot.lane.b32.xlu1 %v3276_v33, %s3476_s10  ;;  %v75_v33 = vld [vmem:[#allocation7 + $0x40] sm:$0xff] }
 0xb96   :  { %3282 = vrot.lane.b32.xlu0 %v3281_v48, %s3476_s10  ;;  %v3149_v48 = vpack.c.bf16 %v76_v40, %v75_v33 }
 0xb99   :  { %1986 = vrot.lane.b32.xlu1 %v3360_v49, %s3469_s29  ;;  %v77_v49 = vld [vmem:[#allocation7 + $0x50] sm:$0xff] }
 0xb9a   :  { %2203 = vrot.lane.b32.xlu0 %v3361_v50, %s3468_s2  ;;  %v78_v50 = vld [vmem:[#allocation7 + $0x58] sm:$0xff] }
 0xb9d   :  { %2205 = vrot.lane.b32.xlu1 %v3362_v51, %s3468_s2  ;;  %v3153_v51 = vpack.c.bf16 %v78_v50, %v77_v49 }
 0xb9e   :  { %2207 = vrot.lane.b32.xlu0 %v3363_v41, %s3468_s2  ;;  %v79_v41 = vld [vmem:[#allocation7 + $0x60] sm:$0xff] }
 0xba1   :  { %2209 = vrot.lane.b32.xlu1 %v3364_v52, %s3468_s2  ;;  %v80_v52 = vld [vmem:[#allocation7 + $0x68] sm:$0xff] }
 0xba2   :  { %2410 = vrot.lane.b32.xlu0 %v2614_v7, %s3476_s10 }
 0xbb0   :  { %v1772_v37 = vpop.permute.xlu1 %1771 }
 0xbfb   :  { %v1770_v36 = vpop.permute.xlu0 %1769 }
 0xbfc   :  { %2929 = vmatprep.mubr.msk.f32.mxu0 %vm97_vm0, %v1770_v36 }
 0xbfd   :  { %2930 = vmatmul.mubr.msk.f32.vlgmr.msra.gmra.mrb[16].mxu0 %vm97_vm0, %v1772_v37 }
 0xbff   :  { %v1774_v31 = vpop.permute.xlu0 %1773 }
 0xc00   :  { %2932 = vmatprep.mubr.msk.f32.mxu0 %vm97_vm0, %v1774_v31 }
 0xc03   :  { %v1776_v34 = vpop.permute.xlu1 %1775 }
 0xc04   :  { %2933 = vmatmul.mubr.msk.f32.gmra.mrb[18].mxu0 %vm97_vm0, %v1776_v34  ;;  %v1883_v39 = vpop.permute.xlu0 %1882 }
 0xc05   :  { %2935 = vmatprep.subr.mxu0 %v1883_v39 }
 0xc06   :  { %2936 = vmatpush3.msra.mxu0 %v1883_v39 }
 0xc07   :  { %v3278_v53 = vpop.permute.xlu1 %3277 }
 0xc08   :  { %v3280_v58 = vunpack.i.h.bf16 %v3278_v53  ;;  %v3279_v35 = vunpack.i.l.bf16 %v3278_v53  ;;  %v3283_v60 = vpop.permute.xlu0 %3282  ;;  %v3157_v53 = vpack.c.bf16 %v80_v52, %v79_v41 }
 0xc09   :  { %v3285_v62 = vunpack.i.h.bf16 %v3283_v60  ;;  %v3284_v63 = vunpack.i.l.bf16 %v3283_v60 }
 0xc0a   :  { %v3117_v2 = vpack.c.bf16 %v3280_v58, %v3279_v35  ;;  %v82_v58 = vld [vmem:[#allocation7 + $0x78] sm:$0xff] }
 0xc0b   :  { %v3121_v3 = vpack.c.bf16 %v3285_v62, %v3284_v63  ;;  %v1987_v8 = vpop.permute.xlu1 %1986 }
 0xc0c   :  { %3118 = vmatprep.subr.bf16.mxu1 %v3117_v2  ;;  %v2204_v26 = vpop.permute.xlu0 %2203 }
 0xc0d   :  { %3120 = vmatpush3.bf16.msra.mxu1 %v3117_v2 }
 0xc0e   :  { %3122 = vmatprep.subr.bf16.mxu1 %v3121_v3 }
 0xc0f   :  { %v2206_v45 = vpop.permute.xlu1 %2205 }
 0xc10   :  { %v2208_v56 = vpop.permute.xlu0 %2207 }
 0xc11   :  { %3124 = vmatpush3.bf16.msra.mxu1 %v3121_v3 }
 0xc12   :  { %3126 = vmatprep.subr.bf16.mxu1 %v3125_v6 }
 0xc13   :  { %v2210_v57 = vpop.permute.xlu1 %2209 }
 0xcd0   :  { %v2931_v54 = vpop.f32.mrb[16].mxu0 }
 0xcd1   :  { %v1863_v61 = vpop.f32.mrb[17].mxu0 }
 0xcd2   :  { %2937 = vmatprep.mubr.msk.f32.mxu0 %vm312_vm1, %v1863_v61 }
 0xcd3   :  { %2938 = vmatmul.mubr.msk.f32.vlgmr.msra.gmra.mrb[8].mxu0 %vm312_vm1, %v2931_v54  ;;  %v81_v54 = vld [vmem:[#allocation7 + $0x70] sm:$0xff] }
 0xcd4   :  { %v3161_v35 = vpack.c.bf16 %v82_v58, %v81_v54 }
 0xcd7   :  { %v2934_v4 = vpop.f32.mrb[18].mxu0 }
 0xcd8   :  { %v1873_v5 = vpop.f32.mrb[19].mxu0 }
 0xcd9   :  { %2940 = vmatprep.mubr.msk.f32.mxu0 %vm312_vm1, %v1873_v5 }
 0xcda   :  { %2941 = vmatmul.mubr.msk.f32.gmra.mrb[10].mxu0 %vm312_vm1, %v2934_v4 }
 0xcdb   :  { %2979 = vmatprep.mubr.msk.f32.mxu0 %vm97_vm0, %v2204_v26 }
 0xda6   :  { %v2939_v9 = vpop.f32.mrb[8].mxu0 }
 0xda7   :  { %v1963_v10 = vpop.f32.mrb[9].mxu0  ;;  %v1990_v12 = vadd.f32 %v2939_v9, %v1987_v8 }
 0xda8   :  { %v1989_v11 = vadd.f32 %v1987_v8, %v1963_v10 }
 0xdaa   :  { %2951 = vmatprep.mubr.msk.f32.mxu1 %vm97_vm0, %v1989_v11 }
 0xdab   :  { %2952 = vmatmul.mubr.msk.f32.vlgmr.msra.gmra.mrb[24].mxu1 %vm97_vm0, %v1990_v12 }
 0xdac   :  { %3128 = vmatpush3.bf16.msra.mxu1 %v3125_v6 }
 0xdad   :  { %v2942_v14 = vpop.f32.mrb[10].mxu0  ;;  %3130 = vmatprep.subr.bf16.mxu1 %v3129_v13 }
 0xdae   :  { %v1973_v15 = vpop.f32.mrb[11].mxu0  ;;  %v1992_v17 = vadd.f32 %v2942_v14, %v1987_v8 }
 0xdaf   :  { %v1991_v16 = vadd.f32 %v1987_v8, %v1973_v15 }
 0xdb0   :  { %3132 = vmatpush3.bf16.msra.mxu1 %v3129_v13 }
 0xdb1   :  { %2954 = vmatprep.mubr.msk.f32.mxu1 %vm97_vm0, %v1991_v16 }
 0xdb2   :  { %2955 = vmatmul.mubr.msk.f32.gmra.mrb[26].mxu1 %vm97_vm0, %v1992_v17 }
 0xdb3   :  { %2965 = vmatprep.mubr.msk.f32.mxu1 %vm97_vm0, %v3365_v18  ;;  %v2411_v18 = vpop.permute.xlu0 %2410 }
 0xdb6   :  { %2966 = vmatmul.mubr.msk.f32.vlgmr.msra.gmra.mrb[24].mxu1 %vm97_vm0, %v3366_v23 }
 0xdb7   :  { %2968 = vmatprep.mubr.msk.f32.mxu1 %vm97_vm0, %v3367_v24 }
 0xdba   :  { %2969 = vmatmul.mubr.msk.f32.gmra.mrb[26].mxu1 %vm97_vm0, %v3368_v25 }
 0xdbb   :  { %2993 = vmatprep.mubr.msk.f32.mxu1 %vm97_vm0, %v2204_v26 }
 0xe89   :  { %v2967_v1 = vpop.f32.mrb[24].mxu1 }
 0xe8a   :  { %v2196_v38 = vadd.f32 %v2967_v1, %v2614_v7  ;;  %v2172_v0 = vpop.f32.mrb[25].mxu1 }
 0xe8b   :  { %v2195_v28 = vadd.f32 %v2614_v7, %v2172_v0 }
 0xe8d   :  { %v3133_v43 = vpack.c.bf16 %v2196_v38, %v2195_v28  ;;  %v2970_v19 = vpop.f32.mrb[26].mxu1 }
 0xe8e   :  { %v2198_v55 = vadd.f32 %v2970_v19, %v2614_v7  ;;  %v2182_v20 = vpop.f32.mrb[27].mxu1 }
 0xe8f   :  { %v2197_v27 = vadd.f32 %v2614_v7, %v2182_v20  ;;  %3134 = vmatprep.subr.bf16.mxu0 %v3133_v43 }
 0xe90   :  { %3136 = vmatpush3.bf16.msra.mxu0 %v3133_v43 }
 0xe91   :  { %v3137_v44 = vpack.c.bf16 %v2198_v55, %v2197_v27 }
 0xe93   :  { %3138 = vmatprep.subr.bf16.mxu0 %v3137_v44 }
 0xe94   :  { %3140 = vmatpush3.bf16.msra.mxu0 %v3137_v44 }
 0xe95   :  { %3150 = vmatprep.subr.bf16.mxu0 %v3149_v48 }
 0xe97   :  { %2980 = vmatmul.mubr.msk.f32.vlgmr.msra.gmra.mrb[20].mxu0 %vm97_vm0, %v2206_v45 }
 0xe98   :  { %2982 = vmatprep.mubr.msk.f32.mxu0 %vm97_vm0, %v2208_v56  ;;  %3152 = vmatpush3.bf16.msra.mxu0 %v3149_v48 }
 0xe99   :  { %3154 = vmatprep.subr.bf16.mxu0 %v3153_v51 }
 0xe9b   :  { %2983 = vmatmul.mubr.msk.f32.gmra.mrb[22].mxu0 %vm97_vm0, %v2210_v57 }
 0xe9c   :  { %3156 = vmatpush3.bf16.msra.mxu0 %v3153_v51 }
 0xe9d   :  { %3158 = vmatprep.subr.bf16.mxu0 %v3157_v53 }
 0xea0   :  { %3160 = vmatpush3.bf16.msra.mxu0 %v3157_v53 }
 0xea1   :  { %3162 = vmatprep.subr.bf16.mxu0 %v3161_v35 }
 0xea4   :  { %3164 = vmatpush3.bf16.msra.mxu0 %v3161_v35 }
 0xf6a   :  { %v2981_v59 = vpop.f32.mrb[20].mxu0 }
 0xf6b   :  { %v2305_v46 = vsub.f32 %v2196_v38, %v2981_v59  ;;  %v2285_v29 = vpop.f32.mrb[21].mxu0 }
 0xf6c   :  { %v2304_v30 = vsub.f32 %v2195_v28, %v2285_v29 }
 0xf6d   :  { %v2309_v21 = vmul.f32 %v2305_v46, %v2305_v46 }
 0xf6e   :  { %v2308_v32 = vmul.f32 %v2304_v30, %v2304_v30  ;;  %v2984_v36 = vpop.f32.mrb[22].mxu0 }
 0xf6f   :  { %v2307_v37 = vsub.f32 %v2198_v55, %v2984_v36  ;;  %v2295_v31 = vpop.f32.mrb[23].mxu0 }
 0xf70   :  { %v2306_v34 = vsub.f32 %v2197_v27, %v2295_v31  ;;  %v3141_v39 = vpack.c.bf16 %v2309_v21, %v2308_v32 }
 0xf71   :  { %v2311_v22 = vmul.f32 %v2307_v37, %v2307_v37 }
 0xf72   :  { %v2310_v42 = vmul.f32 %v2306_v34, %v2306_v34  ;;  %3142 = vmatprep.subr.bf16.mxu1 %v3141_v39 }
 0xf73   :  { %3144 = vmatpush3.bf16.msra.mxu1 %v3141_v39 }
 0xf74   :  { %v3145_v47 = vpack.c.bf16 %v2311_v22, %v2310_v42 }
 0xf76   :  { %3146 = vmatprep.subr.bf16.mxu1 %v3145_v47 }
 0xf77   :  { %3148 = vmatpush3.bf16.msra.mxu1 %v3145_v47 }
 0xf7a   :  { %2994 = vmatmul.mubr.msk.f32.vlgmr.msra.gmra.mrb[28].mxu1 %vm97_vm0, %v2206_v45 }
 0xf7b   :  { %2996 = vmatprep.mubr.msk.f32.mxu1 %vm97_vm0, %v2208_v56 }
 0xf7e   :  { %2997 = vmatmul.mubr.msk.f32.gmra.mrb[30].mxu1 %vm97_vm0, %v2210_v57 }
0x104d   :  { %v2995_v60 = vpop.f32.mrb[28].mxu1 }
0x104e   :  { %v2384_v61 = vadd.f32 1e-05, %v2995_v60  ;;  %v2378_v62 = vpop.f32.mrb[29].mxu1 }
0x104f   :  { %v2379_v63 = vadd.f32 1e-05, %v2378_v62 }
0x1050   :  { %3350 = vrsqrt.f32 %v2384_v61 }
0x1051   :  { %3352 = vrsqrt.f32 %v2379_v63  ;;  %v2998_v2 = vpop.f32.mrb[30].mxu1 }
0x1052   :  { %v2394_v3 = vadd.f32 1e-05, %v2998_v2  ;;  %v2388_v4 = vpop.f32.mrb[31].mxu1 }
0x1053   :  { %v2389_v5 = vadd.f32 1e-05, %v2388_v4 }
0x1054   :  { %3354 = vrsqrt.f32 %v2394_v3 }
0x1055   :  { %3356 = vrsqrt.f32 %v2389_v5 }
0x105a   :  { %v3351_v6 = vpop.eup %3350 }
0x105b   :  { %v3353_v7 = vpop.eup %3352  ;;  %v2402_v8 = vmul.f32 %v3351_v6, %v2305_v46 }
0x105c   :  { %v2401_v9 = vmul.f32 %v3353_v7, %v2304_v30 }
0x105d   :  { %v2406_v13 = vmax.f32 %v2402_v8, 0.0 }
0x105e   :  { %v3355_v10 = vpop.eup %3354  ;;  %v2405_v11 = vmax.f32 %v2401_v9, 0.0 }
0x105f   :  { %v3357_v12 = vpop.eup %3356  ;;  %v2404_v14 = vmul.f32 %v3355_v10, %v2307_v37 }
0x1060   :  { %3015 = vmatprep.mubr.msk.f32.mxu0 %vm2413_vm8, %v2405_v11  ;;  %v2403_v15 = vmul.f32 %v3357_v12, %v2306_v34 }
0x1061   :  { %3016 = vmatmul.mubr.msk.f32.vlgmr.msra.gmra.mrb[24].mxu0 %vm2413_vm8, %v2406_v13  ;;  %v2408_v17 = vmax.f32 %v2404_v14, 0.0 }
0x1062   :  { %v2407_v16 = vmax.f32 %v2403_v15, 0.0 }
0x1064   :  { %3018 = vmatprep.mubr.msk.f32.mxu0 %vm2413_vm8, %v2407_v16 }
0x1065   :  { %3019 = vmatmul.mubr.msk.f32.gmra.mrb[26].mxu0 %vm2413_vm8, %v2408_v17 }
0x1134   :  { %v3017_v23 = vpop.f32.mrb[24].mxu0 }
0x1135   :  { %v2498_v24 = vadd.f32 %v3017_v23, %v2411_v18  ;;  %v2492_v25 = vpop.f32.mrb[25].mxu0 }
0x1136   :  { %v2493_v26 = vadd.f32 %v2492_v25, %v2411_v18 }
0x1137   :  { %2512 = vst.msk [vmem:[#allocation8 + $0x8] sm:$0xff] %vm97_vm0, %v2498_v24 }
0x1138   :  { %2511 = vst.msk [vmem:[#allocation8] sm:$0xff] %vm97_vm0, %v2493_v26  ;;  %v3020_v1 = vpop.f32.mrb[26].mxu0 }
0x1139   :  { %v2508_v38 = vadd.f32 %v3020_v1, %v2411_v18  ;;  %v2502_v0 = vpop.f32.mrb[27].mxu0 }
0x113a   :  { %v2503_v28 = vadd.f32 %v2502_v0, %v2411_v18 }
0x113b   :  { %2514 = vst.msk [vmem:[#allocation8 + $0x18] sm:$0xff] %vm97_vm0, %v2508_v38 }
0x113c   :  { %2513 = vst.msk [vmem:[#allocation8 + $0x10] sm:$0xff] %vm97_vm0, %v2503_v28 }
0x113d   :  { %3446 = shalt.err (!%p3443_p0)
}
0x113e   :  { %s3447_s19 = scalar_lea.hbm %s3942_s4, 512 }
0x113f   :  { %p3448_p1 = scmp.ne.s32.totalorder %s3942_s4, %s3447_s19  ;;  %p3451_p2 = scmp.lt.u32.totalorder %s3447_s19, %s3942_s4 }
0x1141   :  { %p3453_p3 = pnand %p3451_p2, %p3448_p1 }
0x1143   :  { %3456 = shalt.err (!%p3453_p3)
}
0x1144   :  { %2526 = dma.vmem_to_hbm [thread:$0]  %s2521_s14, 512, %s3942_s4, [#allocation4], %s3465_s27, %s3465_s27, %s3466_s28  }
0x1145   :  { %3461 = dma.done.wait [#allocation4], 512  }
0x1146   :  { %3462 = vsyncadd [#allocation4], 4294966784 }
0x1147   :  { %2530 = vsyncpa [#allocation3], 1 }
0x1148   :  { %2531 = vsyncpa [#allocation6], 1 }
0x1149   :  { %2532 = vsyncpa [#allocation4], 1 }

</bundles_post_ra>
